<compile_context>
chip_gen: v5e
topology: v5e:2x2
jax: 0.10.0
libtpu: 0.0.40
codegen_flags: <defaults>
</compile_context>

<pallas_src>
import functools
import math

import jax
import jax.numpy as jnp
from jax.experimental import pallas as pl
from jax.experimental.pallas import tpu as pltpu

LRELU = 0.2


def _lrelu(x):
    return jnp.where(x >= 0.0, x, LRELU * x)


def _round_up(n, m):
    return ((n + m - 1) // m) * m


def _pad2(a, rows, cols):
    r, c = a.shape
    return jnp.pad(a, ((0, rows - r), (0, cols - c)))


def _fullspec(shape):
    zeros = (0,) * len(shape)
    return pl.BlockSpec(shape, lambda *_: zeros)


def _build_mix(n_frame, rate):
    """Static lerp weights [F][n_frame] + per-output-frame channel-slice flag."""
    rows, take_hi = [], []
    w0 = [0.0] * n_frame
    w0[0] = 1.0
    rows.append(w0)
    take_hi.append(True)                       # first frame -> imgs[:, 3:6]
    for i in range(1, n_frame - 1):
        for k in range(rate):
            w = [0.0] * n_frame
            w[i] += k / rate
            w[i - 1] += (rate - k) / rate
            rows.append(w)
            take_hi.append((i - 1) % 2 != 0)   # even i-1 -> 0:3, odd -> 3:6
    return rows, take_hi


# ----------------------------------------------------------------------------
# Kernel 1: fused precompute
#   pixel-norm -> fc1 -> fc2 (mapping) -> modelR recurrence -> static lerp mix
#   -> aff1/aff2 style affines.  Emits per-(frame,batch) style rows s1/s2.
# ----------------------------------------------------------------------------
def _precompute_kernel(z_ref, mw1, mb1, mw2, mb2, wrh, wrl, rbr, rwo, rbo,
                       a1w, a1b, a2w, a2b, s1_ref, s2_ref,
                       *, n_frame, mix_rows, bsz, d_real):
    x = z_ref[...]                                                   # [Bp, Dp]
    # pixel-norm over the *real* style dim (padded lanes are zero).
    x = x * jax.lax.rsqrt(jnp.sum(x * x, axis=-1, keepdims=True) * (1.0 / d_real) + 1e-8)
    x = _lrelu(jnp.dot(x, mw1[...], preferred_element_type=jnp.float32) + mb1[...])
    latent = _lrelu(jnp.dot(x, mw2[...], preferred_element_type=jnp.float32) + mb2[...])

    # modelR: concat([h, latent]) @ Wr == h @ Wr_h + latent @ Wr_l ; the latent
    # half (+bias) is loop-invariant.
    lat_proj = jnp.dot(latent, wrl[...], preferred_element_type=jnp.float32) + rbr[...]
    h = latent
    styles = []
    for _ in range(n_frame):                                         # small static unroll
        h = _lrelu(jnp.dot(h, wrh[...], preferred_element_type=jnp.float32) + lat_proj)
        styles.append(jnp.dot(h, rwo[...], preferred_element_type=jnp.float32) + rbo[...])

    fb = 0
    for row in mix_rows:                                             # static lerp weights
        code = None
        for t, w in enumerate(row):
            if w == 0.0:
                continue
            term = styles[t] if w == 1.0 else styles[t] * w
            code = term if code is None else code + term             # [Bp, Dp]
        s1f = jnp.dot(code, a1w[...], preferred_element_type=jnp.float32) + a1b[...]
        s2f = jnp.dot(code, a2w[...], preferred_element_type=jnp.float32) + a2b[...]
        for b in range(bsz):                                         # real batch rows only
            s1_ref[fb] = s1f[b:b + 1, :]
            s2_ref[fb] = s2f[b:b + 1, :]
            fb += 1


def precompute_styles(z, mix_rows, style_dim, prep):
    B, D = z.shape
    Dp = prep["map_fc1_w"].shape[0]
    C0p = prep["aff1_w"].shape[1]
    C1p = prep["aff2_w"].shape[1]
    Bp = max(8, _round_up(B, 8))
    zp = jnp.pad(z, ((0, Bp - B), (0, Dp - D)))                      # lane/sublane-dense
    n_frame = len(mix_rows[0])
    FB = len(mix_rows) * B

    kernel = functools.partial(
        _precompute_kernel, n_frame=n_frame,
        mix_rows=tuple(tuple(r) for r in mix_rows), bsz=B, d_real=float(style_dim))

    args = (zp,
            prep["map_fc1_w"], prep["map_fc1_b"], prep["map_fc2_w"], prep["map_fc2_b"],
            prep["r_wr_h"], prep["r_wr_l"], prep["r_br"], prep["r_wo"], prep["r_bo"],
            prep["aff1_w"], prep["aff1_b"], prep["aff2_w"], prep["aff2_b"])

    return pl.pallas_call(
        kernel,
        out_shape=(jax.ShapeDtypeStruct((FB, 1, C0p), jnp.float32),
                   jax.ShapeDtypeStruct((FB, 1, C1p), jnp.float32)),
        grid=(1,),
        in_specs=[_fullspec(a.shape) for a in args],
        out_specs=[_fullspec((FB, 1, C0p)), _fullspec((FB, 1, C1p))],
    )(*args)


# ----------------------------------------------------------------------------
# Kernel 2: fused synthesis head.
#   grid = (hw_tile, frame*batch); per step:
#     weight-modulate conv1^T / toRGB^T -> conv1 (+lrelu) -> toRGB computed
#     pre-transposed -> store an [8, TH] (channels x pixels) lane-dense block.
# ----------------------------------------------------------------------------
def _synthesis_kernel(take_ref, s1_ref, s2_ref, const_ref, w1t_ref, b1_ref,
                      tlo_ref, thi_ref, blo_ref, bhi_ref, o_ref):
    fb = pl.program_id(1)
    s1 = s1_ref[fb]                                                  # [1, C0p] f32
    s2 = s2_ref[fb]                                                  # [1, C1p] f32
    hi = take_ref[fb] != 0                                           # scalar from SMEM

    # Weight modulation (f32 VPU), then cast to bf16 MXU operands.
    w1m = (w1t_ref[...] * s1).astype(jnp.bfloat16)                   # [C1p, C0p]
    w2 = jnp.where(hi, thi_ref[...], tlo_ref[...])                   # [8,  C1p] f32
    w2m = (w2 * s2).astype(jnp.bfloat16)
    bias_rgb = jnp.where(hi, bhi_ref[...], blo_ref[...])             # [8, 1] f32

    x = const_ref[...]                                               # [TH, C0p] bf16
    h = jax.lax.dot_general(x, w1m, (((1,), (1,)), ((), ())),
                            preferred_element_type=jnp.float32) + b1_ref[...]
    h = _lrelu(h).astype(jnp.bfloat16)                               # [TH, C1p]

    # toRGB computed pre-transposed: [8, C1p] x [TH, C1p]^T -> [8, TH]
    rgb_t = jax.lax.dot_general(w2m, h, (((1,), (1,)), ((), ())),
                                preferred_element_type=jnp.float32) + bias_rgb
    o_ref[0] = rgb_t                                                 # lane-dense store


def synthesis_batched(take_hi_fb, s1, s2, sp, size):
    FB = s1.shape[0]
    C0p = s1.shape[2]
    C1p = s2.shape[2]
    CSEL = sp["torgb_loT"].shape[0]                                  # 8 (3 real channels)
    HW = size * size
    assert HW % 128 == 0, "H*W must be a multiple of 128 for lane-dense tiles"
    TH = min(HW, 2048)
    assert HW % TH == 0
    n_hw = HW // TH

    flops = int(2 * FB * HW * (C0p * C1p + C1p * CSEL))
    bytes_accessed = int(HW * C0p * 2 + FB * CSEL * HW * 4
                         + (C1p * C0p + 2 * CSEL * C1p + C1p + 2 * CSEL) * 4
                         + FB * 8 * (C0p + C1p) * 4)
    vmem_bytes = int(2 * TH * C0p * 2            # const tile (double-buffered)
                     + 2 * CSEL * TH * 4         # out tile
                     + 2 * 4 * (C1p * C0p + 2 * CSEL * C1p)   # weights
                     + 2 * FB * 8 * (C0p + C1p) * 4           # resident s1/s2
                     + (8 << 20))                # headroom
    vmem_bytes = min(vmem_bytes, 48 << 20)       # stay well under v7x 64 MiB

    grid_spec = pltpu.PrefetchScalarGridSpec(
        num_scalar_prefetch=1,                   # take_hi per (frame, batch)
        grid=(n_hw, FB),
        in_specs=[
            pl.BlockSpec((FB, 1, C0p), lambda hw, fb, _t: (0, 0, 0)),  # s1 (resident)
            pl.BlockSpec((FB, 1, C1p), lambda hw, fb, _t: (0, 0, 0)),  # s2 (resident)
            pl.BlockSpec((TH, C0p),    lambda hw, fb, _t: (hw, 0)),    # const tile
            pl.BlockSpec((C1p, C0p),   lambda hw, fb, _t: (0, 0)),     # conv1_w^T (f32)
            pl.BlockSpec((1, C1p),     lambda hw, fb, _t: (0, 0)),     # conv1_b
            pl.BlockSpec((CSEL, C1p),  lambda hw, fb, _t: (0, 0)),     # toRGB^T (0:3)
            pl.BlockSpec((CSEL, C1p),  lambda hw, fb, _t: (0, 0)),     # toRGB^T (3:6)
            pl.BlockSpec((CSEL, 1),    lambda hw, fb, _t: (0, 0)),     # toRGB bias (0:3)
            pl.BlockSpec((CSEL, 1),    lambda hw, fb, _t: (0, 0)),     # toRGB bias (3:6)
        ],
        out_specs=pl.BlockSpec((1, CSEL, TH), lambda hw, fb, _t: (fb, 0, hw)),
    )
    return pl.pallas_call(
        _synthesis_kernel,
        out_shape=jax.ShapeDtypeStruct((FB, CSEL, HW), jnp.float32),
        grid_spec=grid_spec,
        compiler_params=pltpu.CompilerParams(
            dimension_semantics=("parallel", "parallel"),
            vmem_limit_bytes=vmem_bytes),
        cost_estimate=pl.CostEstimate(flops=flops, transcendentals=0,
                                      bytes_accessed=bytes_accessed),
    )(take_hi_fb, s1, s2, sp["const"], sp["conv1_wT"], sp["conv1_b"],
      sp["torgb_loT"], sp["torgb_hiT"], sp["torgb_b_lo"], sp["torgb_b_hi"])


# ----------------------------------------------------------------------------
# Parameters (deterministic synthetic stand-ins) + padded prep
# ----------------------------------------------------------------------------
def init_params(key, style_dim, size, c0=32, c1=64):
    ks = jax.random.split(key, 10)

    def w(k, shape, scale=None):
        if scale is None:
            scale = 1.0 / math.sqrt(shape[0])
        return jax.random.normal(k, shape, jnp.float32) * scale

    return {
        "map_fc1_w": w(ks[0], (style_dim, style_dim)),
        "map_fc1_b": jnp.zeros((style_dim,), jnp.float32),
        "map_fc2_w": w(ks[1], (style_dim, style_dim)),
        "map_fc2_b": jnp.zeros((style_dim,), jnp.float32),
        "r_wr": w(ks[2], (2 * style_dim, style_dim)),
        "r_br": jnp.zeros((style_dim,), jnp.float32),
        "r_wo": w(ks[3], (style_dim, style_dim)),
        "r_bo": jnp.zeros((style_dim,), jnp.float32),
        "const": w(ks[4], (c0, size, size), scale=1.0),
        "aff1_w": w(ks[5], (style_dim, c0)),
        "aff1_b": jnp.ones((c0,), jnp.float32),
        "aff2_w": w(ks[6], (style_dim, c1)),
        "aff2_b": jnp.ones((c1,), jnp.float32),
        "conv1_w": w(ks[7], (c0, c1)),
        "conv1_b": jnp.zeros((c1,), jnp.float32),
        "torgb_w": w(ks[8], (c1, 6)),       # 6 channels = two stacked RGB frames
        "torgb_b": jnp.zeros((6,), jnp.float32),
    }


def prepare_params(p, size):
    style_dim = p["map_fc1_w"].shape[0]
    c0, c1 = p["conv1_w"].shape
    Dp = _round_up(style_dim, 128)
    C0p, C1p = _round_up(c0, 128), _round_up(c1, 128)
    CSEL = 8                                         # 3 selected RGB channels, padded
    hw = size * size

    const = jnp.transpose(p["const"], (1, 2, 0)).reshape(hw, c0)     # channels-last rows

    def _torgb_T(col_lo):
        wsel = p["torgb_w"][:, col_lo:col_lo + 3]                    # [c1, 3]
        return _pad2(wsel.T, CSEL, C1p)                              # [8, C1p]

    def _torgb_b(col_lo):
        b = p["torgb_b"][col_lo:col_lo + 3].reshape(3, 1)
        return jnp.pad(b, ((0, CSEL - 3), (0, 0)))                   # [8, 1]

    # NOTE: all padded regions of weights/biases below are zero, so padded
    # lanes/sublanes stay exactly zero through every lrelu / matmul.
    return {
        # mapping (zero-padded to 128 lanes, f32)
        "map_fc1_w": _pad2(p["map_fc1_w"], Dp, Dp),
        "map_fc1_b": _pad2(p["map_fc1_b"].reshape(1, -1), 1, Dp),
        "map_fc2_w": _pad2(p["map_fc2_w"], Dp, Dp),
        "map_fc2_b": _pad2(p["map_fc2_b"].reshape(1, -1), 1, Dp),
        # modelR, recurrent weight pre-split (h-half / latent-half)
        "r_wr_h": _pad2(p["r_wr"][:style_dim], Dp, Dp),
        "r_wr_l": _pad2(p["r_wr"][style_dim:], Dp, Dp),
        "r_br": _pad2(p["r_br"].reshape(1, -1), 1, Dp),
        "r_wo": _pad2(p["r_wo"], Dp, Dp),
        "r_bo": _pad2(p["r_bo"].reshape(1, -1), 1, Dp),
        # style affines
        "aff1_w": _pad2(p["aff1_w"], Dp, C0p),
        "aff1_b": _pad2(p["aff1_b"].reshape(1, -1), 1, C0p),
        "aff2_w": _pad2(p["aff2_w"], Dp, C1p),
        "aff2_b": _pad2(p["aff2_b"].reshape(1, -1), 1, C1p),
        # synthesis: bf16 const, pre-transposed f32 weights for weight modulation
        "synth": {
            "const": _pad2(const, hw, C0p).astype(jnp.bfloat16),
            "conv1_wT": _pad2(p["conv1_w"], C0p, C1p).T,             # [C1p, C0p] f32
            "conv1_b": _pad2(p["conv1_b"].reshape(1, -1), 1, C1p),
            "torgb_loT": _torgb_T(0),
            "torgb_hiT": _torgb_T(3),
            "torgb_b_lo": _torgb_b(0),
            "torgb_b_hi": _torgb_b(3),
        },
    }


# ----------------------------------------------------------------------------
# VideoGenerator.forward
# ----------------------------------------------------------------------------
def video_generator_forward(z, n_frame, prep, size, style_dim, interpolation_frame_rate=1):
    B = z.shape[0]
    mix_rows, take_hi = _build_mix(n_frame, interpolation_frame_rate)
    F = len(mix_rows)

    # One fused call: mapping + recurrence + lerp mix + style affines.
    s1, s2 = precompute_styles(z, mix_rows, style_dim, prep)         # [F*B, 1, 128] each

    # Per-(frame,batch) channel-slice flag (scalar-prefetched into SMEM).
    take_hi_fb = jnp.asarray([1 if t else 0 for t in take_hi for _ in range(B)],
                             dtype=jnp.int32)

    # One fused, tiled synthesis call over all (frame, batch) pairs.
    slab = synthesis_batched(take_hi_fb, s1, s2, prep["synth"], size)  # [F*B, 8, HW]

    frames = slab.reshape(F, B, 8, size, size)[:, :, :3]               # real RGB rows
    return jnp.transpose(frames, (1, 0, 2, 3, 4))                      # [B, F, 3, H, W]


# ----------------------------------------------------------------------------
if __name__ == "__main__":
    B, STYLE_DIM, SIZE, N_FRAME = 2, 32, 16, 4
    INTERP_RATE = 1

    params = init_params(jax.random.PRNGKey(1), STYLE_DIM, SIZE)
    prep = prepare_params(params, SIZE)
    z = jax.random.normal(jax.random.PRNGKey(0), (B, STYLE_DIM), jnp.float32)

    fwd = jax.jit(lambda z_, p_: video_generator_forward(
        z_, N_FRAME, p_, SIZE, STYLE_DIM, INTERP_RATE))
    out = jax.block_until_ready(fwd(z, prep))

    expected_t = 1 + (N_FRAME - 2) * INTERP_RATE
    assert out.shape == (B, expected_t, 3, SIZE, SIZE), out.shape
    assert out.dtype == jnp.float32
    assert bool(jnp.all(jnp.isfinite(out)))
    print("KERNEL_OK")
</pallas_src>

<mosaic_0001>
module attributes {stable_mosaic.version = 11 : i64} {
  func.func @_synthesis_kernel(%arg0: i32, %arg1: i32, %arg2: memref<6xi32, #tpu.memory_space<smem>>, %arg3: memref<6x1x128xf32, #tpu.memory_space<vmem>>, %arg4: memref<6x1x128xf32, #tpu.memory_space<vmem>>, %arg5: memref<256x128xbf16, #tpu.memory_space<vmem>>, %arg6: memref<128x128xf32, #tpu.memory_space<vmem>>, %arg7: memref<1x128xf32, #tpu.memory_space<vmem>>, %arg8: memref<8x128xf32, #tpu.memory_space<vmem>>, %arg9: memref<8x128xf32, #tpu.memory_space<vmem>>, %arg10: memref<8x1xf32, #tpu.memory_space<vmem>>, %arg11: memref<8x1xf32, #tpu.memory_space<vmem>>, %arg12: memref<1x8x256xf32, #tpu.memory_space<vmem>>) attributes {dimension_semantics = [#tpu.dimension_semantics<parallel>, #tpu.dimension_semantics<parallel>], iteration_bounds = array<i64: 1, 6>, scalar_prefetch = 1 : i64, scratch_operands = 0 : i64, tpu.core_type = #tpu.core_type<tc>, window_params = [{pipeline_mode = #tpu.pipeline_mode<synchronous>, transform_indices = @transform_0, window_bounds = array<i64: 6, 1, 128>}, {pipeline_mode = #tpu.pipeline_mode<synchronous>, transform_indices = @transform_1, window_bounds = array<i64: 6, 1, 128>}, {transform_indices = @transform_2, window_bounds = array<i64: 256, 128>}, {pipeline_mode = #tpu.pipeline_mode<synchronous>, transform_indices = @transform_3, window_bounds = array<i64: 128, 128>}, {pipeline_mode = #tpu.pipeline_mode<synchronous>, transform_indices = @transform_4, window_bounds = array<i64: 1, 128>}, {pipeline_mode = #tpu.pipeline_mode<synchronous>, transform_indices = @transform_5, window_bounds = array<i64: 8, 128>}, {pipeline_mode = #tpu.pipeline_mode<synchronous>, transform_indices = @transform_6, window_bounds = array<i64: 8, 128>}, {pipeline_mode = #tpu.pipeline_mode<synchronous>, transform_indices = @transform_7, window_bounds = array<i64: 8, 1>}, {pipeline_mode = #tpu.pipeline_mode<synchronous>, transform_indices = @transform_8, window_bounds = array<i64: 8, 1>}, {transform_indices = @transform_9, window_bounds = array<i64: 1, 8, 256>}]} {
    %0 = arith.index_cast %arg1 : i32 to index
    %c0 = arith.constant 0 : index
    %c0_0 = arith.constant 0 : index
    %1 = vector.load %arg3[%0, %c0, %c0_0] : memref<6x1x128xf32, #tpu.memory_space<vmem>>, vector<1x1x128xf32>
    %2 = vector.shape_cast %1 : vector<1x1x128xf32> to vector<1x128xf32>
    %3 = arith.index_cast %arg1 : i32 to index
    %c0_1 = arith.constant 0 : index
    %c0_2 = arith.constant 0 : index
    %4 = vector.load %arg4[%3, %c0_1, %c0_2] : memref<6x1x128xf32, #tpu.memory_space<vmem>>, vector<1x1x128xf32>
    %5 = vector.shape_cast %4 : vector<1x1x128xf32> to vector<1x128xf32>
    %6 = arith.index_cast %arg1 : i32 to index
    %7 = memref.load %arg2[%6] : memref<6xi32, #tpu.memory_space<smem>>
    %c0_i32 = arith.constant 0 : i32
    %8 = arith.cmpi ne, %7, %c0_i32 : i32
    %c0_3 = arith.constant 0 : index
    %c0_4 = arith.constant 0 : index
    %9 = vector.load %arg6[%c0_3, %c0_4] : memref<128x128xf32, #tpu.memory_space<vmem>>, vector<128x128xf32>
    %10 = vector.broadcast %2 : vector<1x128xf32> to vector<128x128xf32>
    %11 = arith.mulf %9, %10 : vector<128x128xf32>
    %12 = arith.truncf %11 : vector<128x128xf32> to vector<128x128xbf16>
    %c0_5 = arith.constant 0 : index
    %c0_6 = arith.constant 0 : index
    %13 = vector.load %arg9[%c0_5, %c0_6] : memref<8x128xf32, #tpu.memory_space<vmem>>, vector<8x128xf32>
    %c0_7 = arith.constant 0 : index
    %c0_8 = arith.constant 0 : index
    %14 = vector.load %arg8[%c0_7, %c0_8] : memref<8x128xf32, #tpu.memory_space<vmem>>, vector<8x128xf32>
    %15 = arith.select %8, %13, %14 : vector<8x128xf32>
    %16 = vector.broadcast %5 : vector<1x128xf32> to vector<8x128xf32>
    %17 = arith.mulf %15, %16 : vector<8x128xf32>
    %18 = arith.truncf %17 : vector<8x128xf32> to vector<8x128xbf16>
    %c0_9 = arith.constant 0 : index
    %c0_10 = arith.constant 0 : index
    %19 = vector.load %arg11[%c0_9, %c0_10] : memref<8x1xf32, #tpu.memory_space<vmem>>, vector<8x1xf32>
    %c0_11 = arith.constant 0 : index
    %c0_12 = arith.constant 0 : index
    %20 = vector.load %arg10[%c0_11, %c0_12] : memref<8x1xf32, #tpu.memory_space<vmem>>, vector<8x1xf32>
    %21 = arith.select %8, %19, %20 : vector<8x1xf32>
    %c0_13 = arith.constant 0 : index
    %c0_14 = arith.constant 0 : index
    %22 = vector.load %arg5[%c0_13, %c0_14] : memref<256x128xbf16, #tpu.memory_space<vmem>>, vector<256x128xbf16>
    %cst = arith.constant dense<0.000000e+00> : vector<256x128xf32>
    %23 = tpu.matmul %22, %12, %cst {dimension_numbers = #tpu.dot_dimension_numbers<[1], [1], [0], [0], [0, 0, 1, 0], [], []>} : vector<256x128xbf16>, vector<128x128xbf16>, vector<256x128xf32> -> vector<256x128xf32>
    %c0_15 = arith.constant 0 : index
    %c0_16 = arith.constant 0 : index
    %24 = vector.load %arg7[%c0_15, %c0_16] : memref<1x128xf32, #tpu.memory_space<vmem>>, vector<1x128xf32>
    %25 = vector.broadcast %24 : vector<1x128xf32> to vector<256x128xf32>
    %26 = arith.addf %23, %25 : vector<256x128xf32>
    %cst_17 = arith.constant 0.000000e+00 : f32
    %27 = vector.broadcast %cst_17 : f32 to vector<256x128xf32>
    %28 = arith.cmpf oge, %26, %27 : vector<256x128xf32>
    %cst_18 = arith.constant 2.000000e-01 : f32
    %29 = vector.broadcast %cst_18 : f32 to vector<256x128xf32>
    %30 = arith.mulf %29, %26 : vector<256x128xf32>
    %31 = arith.select %28, %26, %30 : vector<256x128xi1>, vector<256x128xf32>
    %32 = arith.truncf %31 : vector<256x128xf32> to vector<256x128xbf16>
    %cst_19 = arith.constant dense<0.000000e+00> : vector<8x256xf32>
    %33 = tpu.matmul %18, %32, %cst_19 {dimension_numbers = #tpu.dot_dimension_numbers<[1], [1], [0], [0], [0, 0, 1, 0], [], []>} : vector<8x128xbf16>, vector<256x128xbf16>, vector<8x256xf32> -> vector<8x256xf32>
    %34 = vector.broadcast %21 : vector<8x1xf32> to vector<8x256xf32>
    %35 = arith.addf %33, %34 : vector<8x256xf32>
    %c0_20 = arith.constant 0 : index
    %c0_21 = arith.constant 0 : index
    %c0_22 = arith.constant 0 : index
    %36 = vector.load %arg12[%c0_20, %c0_21, %c0_22] : memref<1x8x256xf32, #tpu.memory_space<vmem>>, vector<1x8x256xf32>
    %37 = vector.shape_cast %36 : vector<1x8x256xf32> to vector<8x256xf32>
    %38 = vector.shape_cast %35 : vector<8x256xf32> to vector<1x8x256xf32>
    tpu.vector_store %arg12[%c0_20, %c0_21, %c0_22], %38 {strides = array<i32>} : memref<1x8x256xf32, #tpu.memory_space<vmem>>, vector<1x8x256xf32>,
    return
  }
  func.func @transform_0(%arg0: i32, %arg1: i32, %arg2: memref<6xi32, #tpu.memory_space<smem>>) -> (i32, i32, i32) {
    %c0_i32 = arith.constant 0 : i32
    %c0_i32_0 = arith.constant 0 : i32
    %c0_i32_1 = arith.constant 0 : i32
    %c0_i32_2 = arith.constant 0 : i32
    return %c0_i32, %c0_i32_0, %c0_i32_1 : i32, i32, i32
  }
  func.func @transform_1(%arg0: i32, %arg1: i32, %arg2: memref<6xi32, #tpu.memory_space<smem>>) -> (i32, i32, i32) {
    %c0_i32 = arith.constant 0 : i32
    %c0_i32_0 = arith.constant 0 : i32
    %c0_i32_1 = arith.constant 0 : i32
    %c0_i32_2 = arith.constant 0 : i32
    return %c0_i32, %c0_i32_0, %c0_i32_1 : i32, i32, i32
  }
  func.func @transform_2(%arg0: i32, %arg1: i32, %arg2: memref<6xi32, #tpu.memory_space<smem>>) -> (i32, i32) {
    %c0_i32 = arith.constant 0 : i32
    %c0_i32_0 = arith.constant 0 : i32
    return %arg0, %c0_i32 : i32, i32
  }
  func.func @transform_3(%arg0: i32, %arg1: i32, %arg2: memref<6xi32, #tpu.memory_space<smem>>) -> (i32, i32) {
    %c0_i32 = arith.constant 0 : i32
    %c0_i32_0 = arith.constant 0 : i32
    %c0_i32_1 = arith.constant 0 : i32
    return %c0_i32, %c0_i32_0 : i32, i32
  }
  func.func @transform_4(%arg0: i32, %arg1: i32, %arg2: memref<6xi32, #tpu.memory_space<smem>>) -> (i32, i32) {
    %c0_i32 = arith.constant 0 : i32
    %c0_i32_0 = arith.constant 0 : i32
    %c0_i32_1 = arith.constant 0 : i32
    return %c0_i32, %c0_i32_0 : i32, i32
  }
  func.func @transform_5(%arg0: i32, %arg1: i32, %arg2: memref<6xi32, #tpu.memory_space<smem>>) -> (i32, i32) {
    %c0_i32 = arith.constant 0 : i32
    %c0_i32_0 = arith.constant 0 : i32
    %c0_i32_1 = arith.constant 0 : i32
    return %c0_i32, %c0_i32_0 : i32, i32
  }
  func.func @transform_6(%arg0: i32, %arg1: i32, %arg2: memref<6xi32, #tpu.memory_space<smem>>) -> (i32, i32) {
    %c0_i32 = arith.constant 0 : i32
    %c0_i32_0 = arith.constant 0 : i32
    %c0_i32_1 = arith.constant 0 : i32
    return %c0_i32, %c0_i32_0 : i32, i32
  }
  func.func @transform_7(%arg0: i32, %arg1: i32, %arg2: memref<6xi32, #tpu.memory_space<smem>>) -> (i32, i32) {
    %c0_i32 = arith.constant 0 : i32
    %c0_i32_0 = arith.constant 0 : i32
    %c0_i32_1 = arith.constant 0 : i32
    return %c0_i32, %c0_i32_0 : i32, i32
  }
  func.func @transform_8(%arg0: i32, %arg1: i32, %arg2: memref<6xi32, #tpu.memory_space<smem>>) -> (i32, i32) {
    %c0_i32 = arith.constant 0 : i32
    %c0_i32_0 = arith.constant 0 : i32
    %c0_i32_1 = arith.constant 0 : i32
    return %c0_i32, %c0_i32_0 : i32, i32
  }
  func.func @transform_9(%arg0: i32, %arg1: i32, %arg2: memref<6xi32, #tpu.memory_space<smem>>) -> (i32, i32, i32) {
    %c0_i32 = arith.constant 0 : i32
    %c0_i32_0 = arith.constant 0 : i32
    return %arg1, %c0_i32, %arg0 : i32, i32, i32
  }
}

module attributes {stable_mosaic.version = 11 : i64} {
  func.func @_precompute_kernel(%arg0: i32, %arg1: memref<8x128xf32, #tpu.memory_space<vmem>>, %arg2: memref<128x128xf32, #tpu.memory_space<vmem>>, %arg3: memref<1x128xf32, #tpu.memory_space<vmem>>, %arg4: memref<128x128xf32, #tpu.memory_space<vmem>>, %arg5: memref<1x128xf32, #tpu.memory_space<vmem>>, %arg6: memref<128x128xf32, #tpu.memory_space<vmem>>, %arg7: memref<128x128xf32, #tpu.memory_space<vmem>>, %arg8: memref<1x128xf32, #tpu.memory_space<vmem>>, %arg9: memref<128x128xf32, #tpu.memory_space<vmem>>, %arg10: memref<1x128xf32, #tpu.memory_space<vmem>>, %arg11: memref<128x128xf32, #tpu.memory_space<vmem>>, %arg12: memref<1x128xf32, #tpu.memory_space<vmem>>, %arg13: memref<128x128xf32, #tpu.memory_space<vmem>>, %arg14: memref<1x128xf32, #tpu.memory_space<vmem>>, %arg15: memref<6x1x128xf32, #tpu.memory_space<vmem>>, %arg16: memref<6x1x128xf32, #tpu.memory_space<vmem>>) attributes {dimension_semantics = [#tpu.dimension_semantics<arbitrary>], iteration_bounds = array<i64: 1>, scalar_prefetch = 0 : i64, scratch_operands = 0 : i64, tpu.core_type = #tpu.core_type<tc>, window_params = [{pipeline_mode = #tpu.pipeline_mode<synchronous>, transform_indices = @transform_0, window_bounds = array<i64: 8, 128>}, {pipeline_mode = #tpu.pipeline_mode<synchronous>, transform_indices = @transform_1, window_bounds = array<i64: 128, 128>}, {pipeline_mode = #tpu.pipeline_mode<synchronous>, transform_indices = @transform_2, window_bounds = array<i64: 1, 128>}, {pipeline_mode = #tpu.pipeline_mode<synchronous>, transform_indices = @transform_3, window_bounds = array<i64: 128, 128>}, {pipeline_mode = #tpu.pipeline_mode<synchronous>, transform_indices = @transform_4, window_bounds = array<i64: 1, 128>}, {pipeline_mode = #tpu.pipeline_mode<synchronous>, transform_indices = @transform_5, window_bounds = array<i64: 128, 128>}, {pipeline_mode = #tpu.pipeline_mode<synchronous>, transform_indices = @transform_6, window_bounds = array<i64: 128, 128>}, {pipeline_mode = #tpu.pipeline_mode<synchronous>, transform_indices = @transform_7, window_bounds = array<i64: 1, 128>}, {pipeline_mode = #tpu.pipeline_mode<synchronous>, transform_indices = @transform_8, window_bounds = array<i64: 128, 128>}, {pipeline_mode = #tpu.pipeline_mode<synchronous>, transform_indices = @transform_9, window_bounds = array<i64: 1, 128>}, {pipeline_mode = #tpu.pipeline_mode<synchronous>, transform_indices = @transform_10, window_bounds = array<i64: 128, 128>}, {pipeline_mode = #tpu.pipeline_mode<synchronous>, transform_indices = @transform_11, window_bounds = array<i64: 1, 128>}, {pipeline_mode = #tpu.pipeline_mode<synchronous>, transform_indices = @transform_12, window_bounds = array<i64: 128, 128>}, {pipeline_mode = #tpu.pipeline_mode<synchronous>, transform_indices = @transform_13, window_bounds = array<i64: 1, 128>}, {pipeline_mode = #tpu.pipeline_mode<synchronous>, transform_indices = @transform_14, window_bounds = array<i64: 6, 1, 128>}, {pipeline_mode = #tpu.pipeline_mode<synchronous>, transform_indices = @transform_15, window_bounds = array<i64: 6, 1, 128>}]} {
    %c0 = arith.constant 0 : index
    %c0_0 = arith.constant 0 : index
    %0 = vector.load %arg1[%c0, %c0_0] : memref<8x128xf32, #tpu.memory_space<vmem>>, vector<8x128xf32>
    %1 = arith.mulf %0, %0 : vector<8x128xf32>
    %cst = arith.constant dense<0.000000e+00> : vector<8xf32>
    %2 = vector.multi_reduction <add>, %1, %cst [1] : vector<8x128xf32> to vector<8xf32>
    %3 = vector.shape_cast %2 : vector<8xf32> to vector<8x1xf32>
    %cst_1 = arith.constant 3.125000e-02 : f32
    %4 = vector.broadcast %cst_1 : f32 to vector<8x1xf32>
    %5 = arith.mulf %3, %4 : vector<8x1xf32>
    %cst_2 = arith.constant 9.99999993E-9 : f32
    %6 = vector.broadcast %cst_2 : f32 to vector<8x1xf32>
    %7 = arith.addf %5, %6 : vector<8x1xf32>
    %8 = math.rsqrt %7 : vector<8x1xf32>
    %9 = vector.broadcast %8 : vector<8x1xf32> to vector<8x128xf32>
    %10 = arith.mulf %0, %9 : vector<8x128xf32>
    %c0_3 = arith.constant 0 : index
    %c0_4 = arith.constant 0 : index
    %11 = vector.load %arg2[%c0_3, %c0_4] : memref<128x128xf32, #tpu.memory_space<vmem>>, vector<128x128xf32>
    %cst_5 = arith.constant dense<0.000000e+00> : vector<8x128xf32>
    %12 = tpu.matmul %10, %11, %cst_5 {dimension_numbers = #tpu.dot_dimension_numbers<[1], [0], [0], [1], [0, 0, 1, 1], [], []>} : vector<8x128xf32>, vector<128x128xf32>, vector<8x128xf32> -> vector<8x128xf32>
    %c0_6 = arith.constant 0 : index
    %c0_7 = arith.constant 0 : index
    %13 = vector.load %arg3[%c0_6, %c0_7] : memref<1x128xf32, #tpu.memory_space<vmem>>, vector<1x128xf32>
    %14 = vector.broadcast %13 : vector<1x128xf32> to vector<8x128xf32>
    %15 = arith.addf %12, %14 : vector<8x128xf32>
    %cst_8 = arith.constant 0.000000e+00 : f32
    %16 = vector.broadcast %cst_8 : f32 to vector<8x128xf32>
    %17 = arith.cmpf oge, %15, %16 : vector<8x128xf32>
    %cst_9 = arith.constant 2.000000e-01 : f32
    %18 = vector.broadcast %cst_9 : f32 to vector<8x128xf32>
    %19 = arith.mulf %18, %15 : vector<8x128xf32>
    %20 = arith.select %17, %15, %19 : vector<8x128xi1>, vector<8x128xf32>
    %c0_10 = arith.constant 0 : index
    %c0_11 = arith.constant 0 : index
    %21 = vector.load %arg4[%c0_10, %c0_11] : memref<128x128xf32, #tpu.memory_space<vmem>>, vector<128x128xf32>
    %cst_12 = arith.constant dense<0.000000e+00> : vector<8x128xf32>
    %22 = tpu.matmul %20, %21, %cst_12 {dimension_numbers = #tpu.dot_dimension_numbers<[1], [0], [0], [1], [0, 0, 1, 1], [], []>} : vector<8x128xf32>, vector<128x128xf32>, vector<8x128xf32> -> vector<8x128xf32>
    %c0_13 = arith.constant 0 : index
    %c0_14 = arith.constant 0 : index
    %23 = vector.load %arg5[%c0_13, %c0_14] : memref<1x128xf32, #tpu.memory_space<vmem>>, vector<1x128xf32>
    %24 = vector.broadcast %23 : vector<1x128xf32> to vector<8x128xf32>
    %25 = arith.addf %22, %24 : vector<8x128xf32>
    %cst_15 = arith.constant 0.000000e+00 : f32
    %26 = vector.broadcast %cst_15 : f32 to vector<8x128xf32>
    %27 = arith.cmpf oge, %25, %26 : vector<8x128xf32>
    %cst_16 = arith.constant 2.000000e-01 : f32
    %28 = vector.broadcast %cst_16 : f32 to vector<8x128xf32>
    %29 = arith.mulf %28, %25 : vector<8x128xf32>
    %30 = arith.select %27, %25, %29 : vector<8x128xi1>, vector<8x128xf32>
    %c0_17 = arith.constant 0 : index
    %c0_18 = arith.constant 0 : index
    %31 = vector.load %arg7[%c0_17, %c0_18] : memref<128x128xf32, #tpu.memory_space<vmem>>, vector<128x128xf32>
    %cst_19 = arith.constant dense<0.000000e+00> : vector<8x128xf32>
    %32 = tpu.matmul %30, %31, %cst_19 {dimension_numbers = #tpu.dot_dimension_numbers<[1], [0], [0], [1], [0, 0, 1, 1], [], []>} : vector<8x128xf32>, vector<128x128xf32>, vector<8x128xf32> -> vector<8x128xf32>
    %c0_20 = arith.constant 0 : index
    %c0_21 = arith.constant 0 : index
    %33 = vector.load %arg8[%c0_20, %c0_21] : memref<1x128xf32, #tpu.memory_space<vmem>>, vector<1x128xf32>
    %34 = vector.broadcast %33 : vector<1x128xf32> to vector<8x128xf32>
    %35 = arith.addf %32, %34 : vector<8x128xf32>
    %c0_22 = arith.constant 0 : index
    %c0_23 = arith.constant 0 : index
    %36 = vector.load %arg6[%c0_22, %c0_23] : memref<128x128xf32, #tpu.memory_space<vmem>>, vector<128x128xf32>
    %cst_24 = arith.constant dense<0.000000e+00> : vector<8x128xf32>
    %37 = tpu.matmul %30, %36, %cst_24 {dimension_numbers = #tpu.dot_dimension_numbers<[1], [0], [0], [1], [0, 0, 1, 1], [], []>} : vector<8x128xf32>, vector<128x128xf32>, vector<8x128xf32> -> vector<8x128xf32>
    %38 = arith.addf %37, %35 : vector<8x128xf32>
    %cst_25 = arith.constant 0.000000e+00 : f32
    %39 = vector.broadcast %cst_25 : f32 to vector<8x128xf32>
    %40 = arith.cmpf oge, %38, %39 : vector<8x128xf32>
    %cst_26 = arith.constant 2.000000e-01 : f32
    %41 = vector.broadcast %cst_26 : f32 to vector<8x128xf32>
    %42 = arith.mulf %41, %38 : vector<8x128xf32>
    %43 = arith.select %40, %38, %42 : vector<8x128xi1>, vector<8x128xf32>
    %c0_27 = arith.constant 0 : index
    %c0_28 = arith.constant 0 : index
    %44 = vector.load %arg9[%c0_27, %c0_28] : memref<128x128xf32, #tpu.memory_space<vmem>>, vector<128x128xf32>
    %cst_29 = arith.constant dense<0.000000e+00> : vector<8x128xf32>
    %45 = tpu.matmul %43, %44, %cst_29 {dimension_numbers = #tpu.dot_dimension_numbers<[1], [0], [0], [1], [0, 0, 1, 1], [], []>} : vector<8x128xf32>, vector<128x128xf32>, vector<8x128xf32> -> vector<8x128xf32>
    %c0_30 = arith.constant 0 : index
    %c0_31 = arith.constant 0 : index
    %46 = vector.load %arg10[%c0_30, %c0_31] : memref<1x128xf32, #tpu.memory_space<vmem>>, vector<1x128xf32>
    %47 = vector.broadcast %46 : vector<1x128xf32> to vector<8x128xf32>
    %48 = arith.addf %45, %47 : vector<8x128xf32>
    %c0_32 = arith.constant 0 : index
    %c0_33 = arith.constant 0 : index
    %49 = vector.load %arg6[%c0_32, %c0_33] : memref<128x128xf32, #tpu.memory_space<vmem>>, vector<128x128xf32>
    %cst_34 = arith.constant dense<0.000000e+00> : vector<8x128xf32>
    %50 = tpu.matmul %43, %49, %cst_34 {dimension_numbers = #tpu.dot_dimension_numbers<[1], [0], [0], [1], [0, 0, 1, 1], [], []>} : vector<8x128xf32>, vector<128x128xf32>, vector<8x128xf32> -> vector<8x128xf32>
    %51 = arith.addf %50, %35 : vector<8x128xf32>
    %cst_35 = arith.constant 0.000000e+00 : f32
    %52 = vector.broadcast %cst_35 : f32 to vector<8x128xf32>
    %53 = arith.cmpf oge, %51, %52 : vector<8x128xf32>
    %cst_36 = arith.constant 2.000000e-01 : f32
    %54 = vector.broadcast %cst_36 : f32 to vector<8x128xf32>
    %55 = arith.mulf %54, %51 : vector<8x128xf32>
    %56 = arith.select %53, %51, %55 : vector<8x128xi1>, vector<8x128xf32>
    %c0_37 = arith.constant 0 : index
    %c0_38 = arith.constant 0 : index
    %57 = vector.load %arg9[%c0_37, %c0_38] : memref<128x128xf32, #tpu.memory_space<vmem>>, vector<128x128xf32>
    %cst_39 = arith.constant dense<0.000000e+00> : vector<8x128xf32>
    %58 = tpu.matmul %56, %57, %cst_39 {dimension_numbers = #tpu.dot_dimension_numbers<[1], [0], [0], [1], [0, 0, 1, 1], [], []>} : vector<8x128xf32>, vector<128x128xf32>, vector<8x128xf32> -> vector<8x128xf32>
    %c0_40 = arith.constant 0 : index
    %c0_41 = arith.constant 0 : index
    %59 = vector.load %arg10[%c0_40, %c0_41] : memref<1x128xf32, #tpu.memory_space<vmem>>, vector<1x128xf32>
    %60 = vector.broadcast %59 : vector<1x128xf32> to vector<8x128xf32>
    %61 = arith.addf %58, %60 : vector<8x128xf32>
    %c0_42 = arith.constant 0 : index
    %c0_43 = arith.constant 0 : index
    %62 = vector.load %arg11[%c0_42, %c0_43] : memref<128x128xf32, #tpu.memory_space<vmem>>, vector<128x128xf32>
    %cst_44 = arith.constant dense<0.000000e+00> : vector<8x128xf32>
    %63 = tpu.matmul %48, %62, %cst_44 {dimension_numbers = #tpu.dot_dimension_numbers<[1], [0], [0], [1], [0, 0, 1, 1], [], []>} : vector<8x128xf32>, vector<128x128xf32>, vector<8x128xf32> -> vector<8x128xf32>
    %c0_45 = arith.constant 0 : index
    %c0_46 = arith.constant 0 : index
    %64 = vector.load %arg12[%c0_45, %c0_46] : memref<1x128xf32, #tpu.memory_space<vmem>>, vector<1x128xf32>
    %65 = vector.broadcast %64 : vector<1x128xf32> to vector<8x128xf32>
    %66 = arith.addf %63, %65 : vector<8x128xf32>
    %c0_47 = arith.constant 0 : index
    %c0_48 = arith.constant 0 : index
    %67 = vector.load %arg13[%c0_47, %c0_48] : memref<128x128xf32, #tpu.memory_space<vmem>>, vector<128x128xf32>
    %cst_49 = arith.constant dense<0.000000e+00> : vector<8x128xf32>
    %68 = tpu.matmul %48, %67, %cst_49 {dimension_numbers = #tpu.dot_dimension_numbers<[1], [0], [0], [1], [0, 0, 1, 1], [], []>} : vector<8x128xf32>, vector<128x128xf32>, vector<8x128xf32> -> vector<8x128xf32>
    %c0_50 = arith.constant 0 : index
    %c0_51 = arith.constant 0 : index
    %69 = vector.load %arg14[%c0_50, %c0_51] : memref<1x128xf32, #tpu.memory_space<vmem>>, vector<1x128xf32>
    %70 = vector.broadcast %69 : vector<1x128xf32> to vector<8x128xf32>
    %71 = arith.addf %68, %70 : vector<8x128xf32>
    %72 = vector.extract_strided_slice %66 {offsets = [0, 0], sizes = [1, 128], strides = [1, 1]} : vector<8x128xf32> to vector<1x128xf32>
    %c0_52 = arith.constant 0 : index
    %c0_53 = arith.constant 0 : index
    %c0_54 = arith.constant 0 : index
    %73 = vector.load %arg15[%c0_52, %c0_53, %c0_54] : memref<6x1x128xf32, #tpu.memory_space<vmem>>, vector<1x1x128xf32>
    %74 = vector.shape_cast %73 : vector<1x1x128xf32> to vector<1x128xf32>
    %75 = vector.shape_cast %72 : vector<1x128xf32> to vector<1x1x128xf32>
    tpu.vector_store %arg15[%c0_52, %c0_53, %c0_54], %75 {strides = array<i32>} : memref<6x1x128xf32, #tpu.memory_space<vmem>>, vector<1x1x128xf32>,
    %76 = vector.extract_strided_slice %71 {offsets = [0, 0], sizes = [1, 128], strides = [1, 1]} : vector<8x128xf32> to vector<1x128xf32>
    %c0_55 = arith.constant 0 : index
    %c0_56 = arith.constant 0 : index
    %c0_57 = arith.constant 0 : index
    %77 = vector.load %arg16[%c0_55, %c0_56, %c0_57] : memref<6x1x128xf32, #tpu.memory_space<vmem>>, vector<1x1x128xf32>
    %78 = vector.shape_cast %77 : vector<1x1x128xf32> to vector<1x128xf32>
    %79 = vector.shape_cast %76 : vector<1x128xf32> to vector<1x1x128xf32>
    tpu.vector_store %arg16[%c0_55, %c0_56, %c0_57], %79 {strides = array<i32>} : memref<6x1x128xf32, #tpu.memory_space<vmem>>, vector<1x1x128xf32>,
    %80 = vector.extract_strided_slice %66 {offsets = [1, 0], sizes = [1, 128], strides = [1, 1]} : vector<8x128xf32> to vector<1x128xf32>
    %c1 = arith.constant 1 : index
    %c0_58 = arith.constant 0 : index
    %c0_59 = arith.constant 0 : index
    %81 = vector.load %arg15[%c1, %c0_58, %c0_59] : memref<6x1x128xf32, #tpu.memory_space<vmem>>, vector<1x1x128xf32>
    %82 = vector.shape_cast %81 : vector<1x1x128xf32> to vector<1x128xf32>
    %83 = vector.shape_cast %80 : vector<1x128xf32> to vector<1x1x128xf32>
    tpu.vector_store %arg15[%c1, %c0_58, %c0_59], %83 {strides = array<i32>} : memref<6x1x128xf32, #tpu.memory_space<vmem>>, vector<1x1x128xf32>,
    %84 = vector.extract_strided_slice %71 {offsets = [1, 0], sizes = [1, 128], strides = [1, 1]} : vector<8x128xf32> to vector<1x128xf32>
    %c1_60 = arith.constant 1 : index
    %c0_61 = arith.constant 0 : index
    %c0_62 = arith.constant 0 : index
    %85 = vector.load %arg16[%c1_60, %c0_61, %c0_62] : memref<6x1x128xf32, #tpu.memory_space<vmem>>, vector<1x1x128xf32>
    %86 = vector.shape_cast %85 : vector<1x1x128xf32> to vector<1x128xf32>
    %87 = vector.shape_cast %84 : vector<1x128xf32> to vector<1x1x128xf32>
    tpu.vector_store %arg16[%c1_60, %c0_61, %c0_62], %87 {strides = array<i32>} : memref<6x1x128xf32, #tpu.memory_space<vmem>>, vector<1x1x128xf32>,
    %c0_63 = arith.constant 0 : index
    %c0_64 = arith.constant 0 : index
    %88 = vector.load %arg11[%c0_63, %c0_64] : memref<128x128xf32, #tpu.memory_space<vmem>>, vector<128x128xf32>
    %cst_65 = arith.constant dense<0.000000e+00> : vector<8x128xf32>
    %89 = tpu.matmul %48, %88, %cst_65 {dimension_numbers = #tpu.dot_dimension_numbers<[1], [0], [0], [1], [0, 0, 1, 1], [], []>} : vector<8x128xf32>, vector<128x128xf32>, vector<8x128xf32> -> vector<8x128xf32>
    %c0_66 = arith.constant 0 : index
    %c0_67 = arith.constant 0 : index
    %90 = vector.load %arg12[%c0_66, %c0_67] : memref<1x128xf32, #tpu.memory_space<vmem>>, vector<1x128xf32>
    %91 = vector.broadcast %90 : vector<1x128xf32> to vector<8x128xf32>
    %92 = arith.addf %89, %91 : vector<8x128xf32>
    %c0_68 = arith.constant 0 : index
    %c0_69 = arith.constant 0 : index
    %93 = vector.load %arg13[%c0_68, %c0_69] : memref<128x128xf32, #tpu.memory_space<vmem>>, vector<128x128xf32>
    %cst_70 = arith.constant dense<0.000000e+00> : vector<8x128xf32>
    %94 = tpu.matmul %48, %93, %cst_70 {dimension_numbers = #tpu.dot_dimension_numbers<[1], [0], [0], [1], [0, 0, 1, 1], [], []>} : vector<8x128xf32>, vector<128x128xf32>, vector<8x128xf32> -> vector<8x128xf32>
    %c0_71 = arith.constant 0 : index
    %c0_72 = arith.constant 0 : index
    %95 = vector.load %arg14[%c0_71, %c0_72] : memref<1x128xf32, #tpu.memory_space<vmem>>, vector<1x128xf32>
    %96 = vector.broadcast %95 : vector<1x128xf32> to vector<8x128xf32>
    %97 = arith.addf %94, %96 : vector<8x128xf32>
    %98 = vector.extract_strided_slice %92 {offsets = [0, 0], sizes = [1, 128], strides = [1, 1]} : vector<8x128xf32> to vector<1x128xf32>
    %c2 = arith.constant 2 : index
    %c0_73 = arith.constant 0 : index
    %c0_74 = arith.constant 0 : index
    %99 = vector.load %arg15[%c2, %c0_73, %c0_74] : memref<6x1x128xf32, #tpu.memory_space<vmem>>, vector<1x1x128xf32>
    %100 = vector.shape_cast %99 : vector<1x1x128xf32> to vector<1x128xf32>
    %101 = vector.shape_cast %98 : vector<1x128xf32> to vector<1x1x128xf32>
    tpu.vector_store %arg15[%c2, %c0_73, %c0_74], %101 {strides = array<i32>} : memref<6x1x128xf32, #tpu.memory_space<vmem>>, vector<1x1x128xf32>,
    %102 = vector.extract_strided_slice %97 {offsets = [0, 0], sizes = [1, 128], strides = [1, 1]} : vector<8x128xf32> to vector<1x128xf32>
    %c2_75 = arith.constant 2 : index
    %c0_76 = arith.constant 0 : index
    %c0_77 = arith.constant 0 : index
    %103 = vector.load %arg16[%c2_75, %c0_76, %c0_77] : memref<6x1x128xf32, #tpu.memory_space<vmem>>, vector<1x1x128xf32>
    %104 = vector.shape_cast %103 : vector<1x1x128xf32> to vector<1x128xf32>
    %105 = vector.shape_cast %102 : vector<1x128xf32> to vector<1x1x128xf32>
    tpu.vector_store %arg16[%c2_75, %c0_76, %c0_77], %105 {strides = array<i32>} : memref<6x1x128xf32, #tpu.memory_space<vmem>>, vector<1x1x128xf32>,
    %106 = vector.extract_strided_slice %92 {offsets = [1, 0], sizes = [1, 128], strides = [1, 1]} : vector<8x128xf32> to vector<1x128xf32>
    %c3 = arith.constant 3 : index
    %c0_78 = arith.constant 0 : index
    %c0_79 = arith.constant 0 : index
    %107 = vector.load %arg15[%c3, %c0_78, %c0_79] : memref<6x1x128xf32, #tpu.memory_space<vmem>>, vector<1x1x128xf32>
    %108 = vector.shape_cast %107 : vector<1x1x128xf32> to vector<1x128xf32>
    %109 = vector.shape_cast %106 : vector<1x128xf32> to vector<1x1x128xf32>
    tpu.vector_store %arg15[%c3, %c0_78, %c0_79], %109 {strides = array<i32>} : memref<6x1x128xf32, #tpu.memory_space<vmem>>, vector<1x1x128xf32>,
    %110 = vector.extract_strided_slice %97 {offsets = [1, 0], sizes = [1, 128], strides = [1, 1]} : vector<8x128xf32> to vector<1x128xf32>
    %c3_80 = arith.constant 3 : index
    %c0_81 = arith.constant 0 : index
    %c0_82 = arith.constant 0 : index
    %111 = vector.load %arg16[%c3_80, %c0_81, %c0_82] : memref<6x1x128xf32, #tpu.memory_space<vmem>>, vector<1x1x128xf32>
    %112 = vector.shape_cast %111 : vector<1x1x128xf32> to vector<1x128xf32>
    %113 = vector.shape_cast %110 : vector<1x128xf32> to vector<1x1x128xf32>
    tpu.vector_store %arg16[%c3_80, %c0_81, %c0_82], %113 {strides = array<i32>} : memref<6x1x128xf32, #tpu.memory_space<vmem>>, vector<1x1x128xf32>,
    %c0_83 = arith.constant 0 : index
    %c0_84 = arith.constant 0 : index
    %114 = vector.load %arg11[%c0_83, %c0_84] : memref<128x128xf32, #tpu.memory_space<vmem>>, vector<128x128xf32>
    %cst_85 = arith.constant dense<0.000000e+00> : vector<8x128xf32>
    %115 = tpu.matmul %61, %114, %cst_85 {dimension_numbers = #tpu.dot_dimension_numbers<[1], [0], [0], [1], [0, 0, 1, 1], [], []>} : vector<8x128xf32>, vector<128x128xf32>, vector<8x128xf32> -> vector<8x128xf32>
    %c0_86 = arith.constant 0 : index
    %c0_87 = arith.constant 0 : index
    %116 = vector.load %arg12[%c0_86, %c0_87] : memref<1x128xf32, #tpu.memory_space<vmem>>, vector<1x128xf32>
    %117 = vector.broadcast %116 : vector<1x128xf32> to vector<8x128xf32>
    %118 = arith.addf %115, %117 : vector<8x128xf32>
    %c0_88 = arith.constant 0 : index
    %c0_89 = arith.constant 0 : index
    %119 = vector.load %arg13[%c0_88, %c0_89] : memref<128x128xf32, #tpu.memory_space<vmem>>, vector<128x128xf32>
    %cst_90 = arith.constant dense<0.000000e+00> : vector<8x128xf32>
    %120 = tpu.matmul %61, %119, %cst_90 {dimension_numbers = #tpu.dot_dimension_numbers<[1], [0], [0], [1], [0, 0, 1, 1], [], []>} : vector<8x128xf32>, vector<128x128xf32>, vector<8x128xf32> -> vector<8x128xf32>
    %c0_91 = arith.constant 0 : index
    %c0_92 = arith.constant 0 : index
    %121 = vector.load %arg14[%c0_91, %c0_92] : memref<1x128xf32, #tpu.memory_space<vmem>>, vector<1x128xf32>
    %122 = vector.broadcast %121 : vector<1x128xf32> to vector<8x128xf32>
    %123 = arith.addf %120, %122 : vector<8x128xf32>
    %124 = vector.extract_strided_slice %118 {offsets = [0, 0], sizes = [1, 128], strides = [1, 1]} : vector<8x128xf32> to vector<1x128xf32>
    %c4 = arith.constant 4 : index
    %c0_93 = arith.constant 0 : index
    %c0_94 = arith.constant 0 : index
    %125 = vector.load %arg15[%c4, %c0_93, %c0_94] : memref<6x1x128xf32, #tpu.memory_space<vmem>>, vector<1x1x128xf32>
    %126 = vector.shape_cast %125 : vector<1x1x128xf32> to vector<1x128xf32>
    %127 = vector.shape_cast %124 : vector<1x128xf32> to vector<1x1x128xf32>
    tpu.vector_store %arg15[%c4, %c0_93, %c0_94], %127 {strides = array<i32>} : memref<6x1x128xf32, #tpu.memory_space<vmem>>, vector<1x1x128xf32>,
    %128 = vector.extract_strided_slice %123 {offsets = [0, 0], sizes = [1, 128], strides = [1, 1]} : vector<8x128xf32> to vector<1x128xf32>
    %c4_95 = arith.constant 4 : index
    %c0_96 = arith.constant 0 : index
    %c0_97 = arith.constant 0 : index
    %129 = vector.load %arg16[%c4_95, %c0_96, %c0_97] : memref<6x1x128xf32, #tpu.memory_space<vmem>>, vector<1x1x128xf32>
    %130 = vector.shape_cast %129 : vector<1x1x128xf32> to vector<1x128xf32>
    %131 = vector.shape_cast %128 : vector<1x128xf32> to vector<1x1x128xf32>
    tpu.vector_store %arg16[%c4_95, %c0_96, %c0_97], %131 {strides = array<i32>} : memref<6x1x128xf32, #tpu.memory_space<vmem>>, vector<1x1x128xf32>,
    %132 = vector.extract_strided_slice %118 {offsets = [1, 0], sizes = [1, 128], strides = [1, 1]} : vector<8x128xf32> to vector<1x128xf32>
    %c5 = arith.constant 5 : index
    %c0_98 = arith.constant 0 : index
    %c0_99 = arith.constant 0 : index
    %133 = vector.load %arg15[%c5, %c0_98, %c0_99] : memref<6x1x128xf32, #tpu.memory_space<vmem>>, vector<1x1x128xf32>
    %134 = vector.shape_cast %133 : vector<1x1x128xf32> to vector<1x128xf32>
    %135 = vector.shape_cast %132 : vector<1x128xf32> to vector<1x1x128xf32>
    tpu.vector_store %arg15[%c5, %c0_98, %c0_99], %135 {strides = array<i32>} : memref<6x1x128xf32, #tpu.memory_space<vmem>>, vector<1x1x128xf32>,
    %136 = vector.extract_strided_slice %123 {offsets = [1, 0], sizes = [1, 128], strides = [1, 1]} : vector<8x128xf32> to vector<1x128xf32>
    %c5_100 = arith.constant 5 : index
    %c0_101 = arith.constant 0 : index
    %c0_102 = arith.constant 0 : index
    %137 = vector.load %arg16[%c5_100, %c0_101, %c0_102] : memref<6x1x128xf32, #tpu.memory_space<vmem>>, vector<1x1x128xf32>
    %138 = vector.shape_cast %137 : vector<1x1x128xf32> to vector<1x128xf32>
    %139 = vector.shape_cast %136 : vector<1x128xf32> to vector<1x1x128xf32>
    tpu.vector_store %arg16[%c5_100, %c0_101, %c0_102], %139 {strides = array<i32>} : memref<6x1x128xf32, #tpu.memory_space<vmem>>, vector<1x1x128xf32>,
    return
  }
  func.func @transform_0(%arg0: i32) -> (i32, i32) {
    %c0_i32 = arith.constant 0 : i32
    %c0_i32_0 = arith.constant 0 : i32
    %c0_i32_1 = arith.constant 0 : i32
    return %c0_i32, %c0_i32_0 : i32, i32
  }
  func.func @transform_1(%arg0: i32) -> (i32, i32) {
    %c0_i32 = arith.constant 0 : i32
    %c0_i32_0 = arith.constant 0 : i32
    %c0_i32_1 = arith.constant 0 : i32
    return %c0_i32, %c0_i32_0 : i32, i32
  }
  func.func @transform_2(%arg0: i32) -> (i32, i32) {
    %c0_i32 = arith.constant 0 : i32
    %c0_i32_0 = arith.constant 0 : i32
    %c0_i32_1 = arith.constant 0 : i32
    return %c0_i32, %c0_i32_0 : i32, i32
  }
  func.func @transform_3(%arg0: i32) -> (i32, i32) {
    %c0_i32 = arith.constant 0 : i32
    %c0_i32_0 = arith.constant 0 : i32
    %c0_i32_1 = arith.constant 0 : i32
    return %c0_i32, %c0_i32_0 : i32, i32
  }
  func.func @transform_4(%arg0: i32) -> (i32, i32) {
    %c0_i32 = arith.constant 0 : i32
    %c0_i32_0 = arith.constant 0 : i32
    %c0_i32_1 = arith.constant 0 : i32
    return %c0_i32, %c0_i32_0 : i32, i32
  }
  func.func @transform_5(%arg0: i32) -> (i32, i32) {
    %c0_i32 = arith.constant 0 : i32
    %c0_i32_0 = arith.constant 0 : i32
    %c0_i32_1 = arith.constant 0 : i32
    return %c0_i32, %c0_i32_0 : i32, i32
  }
  func.func @transform_6(%arg0: i32) -> (i32, i32) {
    %c0_i32 = arith.constant 0 : i32
    %c0_i32_0 = arith.constant 0 : i32
    %c0_i32_1 = arith.constant 0 : i32
    return %c0_i32, %c0_i32_0 : i32, i32
  }
  func.func @transform_7(%arg0: i32) -> (i32, i32) {
    %c0_i32 = arith.constant 0 : i32
    %c0_i32_0 = arith.constant 0 : i32
    %c0_i32_1 = arith.constant 0 : i32
    return %c0_i32, %c0_i32_0 : i32, i32
  }
  func.func @transform_8(%arg0: i32) -> (i32, i32) {
    %c0_i32 = arith.constant 0 : i32
    %c0_i32_0 = arith.constant 0 : i32
    %c0_i32_1 = arith.constant 0 : i32
    return %c0_i32, %c0_i32_0 : i32, i32
  }
  func.func @transform_9(%arg0: i32) -> (i32, i32) {
    %c0_i32 = arith.constant 0 : i32
    %c0_i32_0 = arith.constant 0 : i32
    %c0_i32_1 = arith.constant 0 : i32
    return %c0_i32, %c0_i32_0 : i32, i32
  }
  func.func @transform_10(%arg0: i32) -> (i32, i32) {
    %c0_i32 = arith.constant 0 : i32
    %c0_i32_0 = arith.constant 0 : i32
    %c0_i32_1 = arith.constant 0 : i32
    return %c0_i32, %c0_i32_0 : i32, i32
  }
  func.func @transform_11(%arg0: i32) -> (i32, i32) {
    %c0_i32 = arith.constant 0 : i32
    %c0_i32_0 = arith.constant 0 : i32
    %c0_i32_1 = arith.constant 0 : i32
    return %c0_i32, %c0_i32_0 : i32, i32
  }
  func.func @transform_12(%arg0: i32) -> (i32, i32) {
    %c0_i32 = arith.constant 0 : i32
    %c0_i32_0 = arith.constant 0 : i32
    %c0_i32_1 = arith.constant 0 : i32
    return %c0_i32, %c0_i32_0 : i32, i32
  }
  func.func @transform_13(%arg0: i32) -> (i32, i32) {
    %c0_i32 = arith.constant 0 : i32
    %c0_i32_0 = arith.constant 0 : i32
    %c0_i32_1 = arith.constant 0 : i32
    return %c0_i32, %c0_i32_0 : i32, i32
  }
  func.func @transform_14(%arg0: i32) -> (i32, i32, i32) {
    %c0_i32 = arith.constant 0 : i32
    %c0_i32_0 = arith.constant 0 : i32
    %c0_i32_1 = arith.constant 0 : i32
    %c0_i32_2 = arith.constant 0 : i32
    return %c0_i32, %c0_i32_0, %c0_i32_1 : i32, i32, i32
  }
  func.func @transform_15(%arg0: i32) -> (i32, i32, i32) {
    %c0_i32 = arith.constant 0 : i32
    %c0_i32_0 = arith.constant 0 : i32
    %c0_i32_1 = arith.constant 0 : i32
    %c0_i32_2 = arith.constant 0 : i32
    return %c0_i32, %c0_i32_0, %c0_i32_1 : i32, i32, i32
  }
}

</mosaic_0001>

<bundles_post_ra>
// kernel: _lambda_.3
= control target key start
LH: loop header
LB: loop body
LE: loop exit
PB: predicated region body
PF: predicated region fallthrough
CT: control target
= control target key end

     0   :  { %s1190_s16 = smov [#allocation3]   ;;  %s1465_s0 = inlined_call_operand.vmem [shape: s32[6], index: 0, kind: input, shape index: {}]   ;;  %s1466_s1 = inlined_call_operand.vmem [shape: f32[6,1,128], index: 1, kind: input, shape index: {}]   ;;  %s1467_s2 = inlined_call_operand.vmem [shape: f32[6,1,128], index: 2, kind: input, shape index: {}]   ;;  %s1468_s3 = inlined_call_operand.hbm [shape: bf16[256,128], index: 3, kind: input, shape index: {}]   ;;  %s1469_s4 = inlined_call_operand.hbm [shape: f32[128,128], index: 4, kind: input, shape index: {}]   ;;  %s1470_s5 = inlined_call_operand.vmem [shape: f32[1,128], index: 5, kind: input, shape index: {}]   ;;  %s1471_s6 = inlined_call_operand.vmem [shape: f32[8,128], index: 6, kind: input, shape index: {}]   ;;  %s1472_s7 = inlined_call_operand.vmem [shape: f32[8,128], index: 7, kind: input, shape index: {}]   ;;  %s1473_s8 = inlined_call_operand.vmem [shape: f32[8,1], index: 8, kind: input, shape index: {}]   ;;  %s1474_s9 = inlined_call_operand.vmem [shape: f32[8,1], index: 9, kind: input, shape index: {}]   ;;  %s1475_s10 = inlined_call_operand.vmem [shape: f32[6,8,256], index: 10, kind: output, shape index: {}]  }
   0x1   :  { %s16_s15 = sshll.u32 %s1465_s0, 4  ;;  %s17_s15 = int_to_ptr.vmem [resolvable:$true] %s16_s15 }
   0x2   :  { %19 = dma.vmem_to_smem %s17_s15, 16, %s1190_s16, [#allocation2] }
   0x3   :  { %1168 = dma.done.wait [#allocation2], 16 }
   0x4   :  { %1169 = vsyncadd [#allocation2], 4294967280 }
   0x5   :  { %22 = sfence }
   0x6   :  { %23 = vsyncpa [#allocation5], 0 }
   0x7   :  { %24 = vsyncpa [#allocation7], 0  ;;  %s1256_s17 = smov 0   ;;  %s1258_s18 = smov 0  }
   0x8   :  { %s1260_s19 = smov 0  }
   0x9 LB: > { %s912_s0 = sadd.s32 4294967295, %s1188_s19   ;;  %s39_s20 = sadd.s32 1, %s1184_s18  ;;  %s1188_s19 = sphi %s1260_s19, %s30_s19   ;;  %s1184_s18 = sphi %s1258_s18, %s1481_s18   ;;  %s1180_s17 = sphi %s1256_s17, %s1480_s17  }
   0xa   : > { %p40_p0 = scmp.ge.s32.totalorder %s39_s20, 6  ;;  %p914_p1 = scmp.ge.s32.totalorder %s1188_s19, 1 }
   0xb   : > { %p269_p2 = scmp.lt.s32.totalorder %s1188_s19, 7  ;;  %p1281_p4 = scmp.eq.s32.totalorder %s912_s0, 0 }
   0xc   : > { %s1483_s20 = smov (%p40_p0, %s39_s20), 0  ;;  %s289_s25 = sshll.u32 %s1468_s3, 4  ;;  %s290_s25 = int_to_ptr.hbm [resolvable:$true] %s289_s25 }
   0xd   : > { %p1277_p3 = pnand %p914_p1, %p269_p2  ;;  %s1191_s26 = smov [#allocation4]  }
   0xe   : > { %s291_s27 = sshll.u32 %s1191_s26, 4  ;;  %s303_s30 = sshll.u32 %s1469_s4, 4  ;;  %s292_s27 = int_to_ptr.vmem [resolvable:$true] %s291_s27  ;;  %s304_s30 = int_to_ptr.hbm [resolvable:$true] %s303_s30 }
   0xf   : > { %p1037_p5 = pneg %p1277_p3  ;;  %s1192_s11 = smov 64  }
  0x10   : > { %s1193_s12 = smov 4   ;;  %s1194_s13 = smov [#allocation6]  }
  0x11   : > { %p1038_p6 = pnand %p1281_p4, %p1037_p5  ;;  %s305_s14 = sshll.u32 %s1194_s13, 4  ;;  %s306_s14 = int_to_ptr.vmem [resolvable:$true] %s305_s14 }
  0x12   : > { %s1195_s15 = smov 128   ;;  %s1196_s16 = smov 8  }
  0x13   : > { %1040 = dma.hbm_to_vmem [thread:$0]  (!%p1038_p6), %s290_s25, 2048, %s292_s27, [#allocation5], %s1192_s11, %s1192_s11, %s1193_s12  }
  0x14   : > { %1043 = dma.hbm_to_vmem [thread:$0]  (!%p1038_p6), %s304_s30, 2048, %s306_s14, [#allocation7], %s1195_s15, %s1195_s15, %s1196_s16  }
  0x15   : > { %336 = sbr.rel (%p1277_p3) target bundleno = 513 (0x201), region = 56 }
  0x1a   : > { %1171 = dma.done.wait (%p1281_p4), [#allocation5], 2048  }
  0x1b   : > { %1173 = vsyncadd (%p1281_p4), [#allocation5], 4294965248 }
  0x1c   : > { %1175 = dma.done.wait (%p1281_p4), [#allocation7], 2048  }
  0x1d   : > { %1177 = vsyncadd (%p1281_p4), [#allocation7], 4294965248  ;;  %s388_s24 = scalar_lea.vmem %s1466_s1, %s1180_s17  ;;  %v408_v0 = vld [vmem:[#allocation6 + $0x70] sm:$0xff]  ;;  %v409_v1 = vld [vmem:[#allocation6 + $0x78] sm:$0xff]  ;;  %s390_s27 = scalar_lea.vmem %s1467_s2, %s1180_s17 }
  0x1e   : > { %v1309_v2 = vld [vmem:[%s388_s24] ss:$0 sm:$0xff]  ;;  %v407_v6 = vld [vmem:[#allocation6 + $0x68] sm:$0xff]  ;;  %v404_v11 = vld [vmem:[#allocation6 + $0x50] sm:$0xff]  ;;  %s392_s28 = sld [smem:[#allocation3 + %s1180_s17]]  ;;  %p379_p8 = scmp.lt.s32.totalorder %s1180_s17, 5 }
  0x1f   : > { %v427_v3 = vmul.f32 %v1309_v2, %v408_v0  ;;  %v428_v4 = vmul.f32 %v1309_v2, %v409_v1  ;;  %v406_v5 = vld [vmem:[#allocation6 + $0x60] sm:$0xff]  ;;  %v426_v9 = vmul.f32 %v1309_v2, %v407_v6  ;;  %v405_v12 = vld [vmem:[#allocation6 + $0x58] sm:$0xff]  ;;  %v423_v13 = vmul.f32 %v1309_v2, %v404_v11  ;;  %v403_v17 = vld [vmem:[#allocation6 + $0x48] sm:$0xff] }
  0x20   : > { %v425_v8 = vmul.f32 %v1309_v2, %v406_v5  ;;  %v424_v14 = vmul.f32 %v1309_v2, %v405_v12  ;;  %v402_v16 = vld [vmem:[#allocation6 + $0x40] sm:$0xff]  ;;  %v422_v19 = vmul.f32 %v1309_v2, %v403_v17  ;;  %v400_v21 = vld [vmem:[#allocation6 + $0x30] sm:$0xff]  ;;  %v401_v22 = vld [vmem:[#allocation6 + $0x38] sm:$0xff]  ;;  %s1485_s17 = smov (!%p379_p8, %s1180_s17), 5 }
  0x21   : > { %v436_v7 = vpack.c.bf16 %v428_v4, %v427_v3  ;;  %v421_v18 = vmul.f32 %v1309_v2, %v402_v16  ;;  %v419_v23 = vmul.f32 %v1309_v2, %v400_v21  ;;  %v420_v24 = vmul.f32 %v1309_v2, %v401_v22  ;;  %v398_v26 = vld [vmem:[#allocation6 + $0x20] sm:$0xff]  ;;  %v399_v27 = vld [vmem:[#allocation6 + $0x28] sm:$0xff]  ;;  %v396_v31 = vld [vmem:[#allocation6 + $0x10] sm:$0xff]  ;;  %s988_s21 = sshll.u32 %s1485_s17, 4 }
  0x22   : > { %v435_v10 = vpack.c.bf16 %v426_v9, %v425_v8  ;;  %v434_v15 = vpack.c.bf16 %v424_v14, %v423_v13  ;;  %v417_v28 = vmul.f32 %v1309_v2, %v398_v26  ;;  %v418_v29 = vmul.f32 %v1309_v2, %v399_v27  ;;  %v397_v32 = vld [vmem:[#allocation6 + $0x18] sm:$0xff]  ;;  %v394_v36 = vld [vmem:[#allocation6] sm:$0xff]  ;;  %v395_v37 = vld [vmem:[#allocation6 + $0x8] sm:$0xff]  ;;  %s386_s26 = scalar_lea.vmem %s1475_s10, %s988_s21 }
  0x23   : > { %583 = vmatpush.bf16.xpose.msra.mxu0 %v436_v7  ;;  %1005 = vmatpush.bf16.xpose.msra.mxu1 %v436_v7  ;;  %v433_v20 = vpack.c.bf16 %v422_v19, %v421_v18  ;;  %v432_v25 = vpack.c.bf16 %v420_v24, %v419_v23  ;;  %v415_v33 = vmul.f32 %v1309_v2, %v396_v31  ;;  %v989_v41 = vld [vmem:[#allocation4] sm:$0xff]  ;;  %v994_v42 = vld [vmem:[#allocation4 + $0x28] sm:$0xff]  ;;  %v1000_v43 = vld [vmem:[#allocation4 + $0x58] sm:$0xff] }
  0x24   : > { %1007 = vmatpush.bf16.xpose.msra.mxu3 %v436_v7  ;;  %1006 = vmatpush.bf16.xpose.msra.mxu2 %v436_v7  ;;  %v431_v30 = vpack.c.bf16 %v418_v29, %v417_v28  ;;  %v416_v34 = vmul.f32 %v1309_v2, %v397_v32  ;;  %v413_v38 = vmul.f32 %v1309_v2, %v394_v36  ;;  %v990_v44 = vld [vmem:[#allocation4 + $0x8] sm:$0xff]  ;;  %v995_v45 = vld [vmem:[#allocation4 + $0x30] sm:$0xff]  ;;  %v1001_v46 = vld [vmem:[#allocation4 + $0x60] sm:$0xff]  ;;  %p393_p7 = scmp.ne.s32.totalorder %s392_s28, 0 }
  0x25   : > { %v414_v39 = vmul.f32 %v1309_v2, %v395_v37  ;;  %v991_v47 = vld [vmem:[#allocation4 + $0x10] sm:$0xff]  ;;  %v996_v48 = vld [vmem:[#allocation4 + $0x38] sm:$0xff]  ;;  %v1002_v49 = vld [vmem:[#allocation4 + $0x68] sm:$0xff] }
  0x26   : > { %v430_v35 = vpack.c.bf16 %v416_v34, %v415_v33  ;;  %v998_v50 = vld [vmem:[#allocation4 + $0x48] sm:$0xff]  ;;  %v992_v51 = vld [vmem:[#allocation4 + $0x18] sm:$0xff]  ;;  %v997_v52 = vld [vmem:[#allocation4 + $0x40] sm:$0xff]  ;;  %s439_s29 = scalar_select %p393_p7, 1, 0 }
  0x27   : > { %v429_v40 = vpack.c.bf16 %v414_v39, %v413_v38  ;;  %v1003_v53 = vld [vmem:[#allocation4 + $0x70] sm:$0xff]  ;;  %v993_v55 = vld [vmem:[#allocation4 + $0x20] sm:$0xff]  ;;  %v1004_v56 = vld [vmem:[#allocation4 + $0x78] sm:$0xff] }
  0x28   : > { %v999_v54 = vld [vmem:[#allocation4 + $0x50] sm:$0xff]  ;;  %v1332_v59 = vld [vmem:[%s1470_s5] ss:$0 sm:$0xff] }
  0x2b   : > { %584 = vmatpush.bf16.xpose.msra.mxu0 %v435_v10  ;;  %1008 = vmatpush.bf16.xpose.msra.mxu1 %v435_v10 }
  0x2c   : > { %1010 = vmatpush.bf16.xpose.msra.mxu3 %v435_v10  ;;  %1009 = vmatpush.bf16.xpose.msra.mxu2 %v435_v10 }
  0x33   : > { %585 = vmatpush.bf16.xpose.msra.mxu0 %v434_v15  ;;  %1011 = vmatpush.bf16.xpose.msra.mxu1 %v434_v15 }
  0x34   : > { %1013 = vmatpush.bf16.xpose.msra.mxu3 %v434_v15  ;;  %1012 = vmatpush.bf16.xpose.msra.mxu2 %v434_v15 }
  0x3b   : > { %586 = vmatpush.bf16.xpose.msra.mxu0 %v433_v20  ;;  %1014 = vmatpush.bf16.xpose.msra.mxu1 %v433_v20 }
  0x3c   : > { %1016 = vmatpush.bf16.xpose.msra.mxu3 %v433_v20  ;;  %1015 = vmatpush.bf16.xpose.msra.mxu2 %v433_v20 }
  0x43   : > { %587 = vmatpush.bf16.xpose.msra.mxu0 %v432_v25  ;;  %1017 = vmatpush.bf16.xpose.msra.mxu1 %v432_v25 }
  0x44   : > { %1019 = vmatpush.bf16.xpose.msra.mxu3 %v432_v25  ;;  %1018 = vmatpush.bf16.xpose.msra.mxu2 %v432_v25 }
  0x4b   : > { %588 = vmatpush.bf16.xpose.msra.mxu0 %v431_v30  ;;  %1020 = vmatpush.bf16.xpose.msra.mxu1 %v431_v30 }
  0x4c   : > { %1022 = vmatpush.bf16.xpose.msra.mxu3 %v431_v30  ;;  %1021 = vmatpush.bf16.xpose.msra.mxu2 %v431_v30 }
  0x53   : > { %589 = vmatpush.bf16.xpose.msra.mxu0 %v430_v35  ;;  %1023 = vmatpush.bf16.xpose.msra.mxu1 %v430_v35 }
  0x54   : > { %1025 = vmatpush.bf16.xpose.msra.mxu3 %v430_v35  ;;  %1024 = vmatpush.bf16.xpose.msra.mxu2 %v430_v35 }
  0x5b   : > { %590 = vmatpush.bf16.xpose.msra.mxu0 %v429_v40  ;;  %1026 = vmatpush.bf16.xpose.msra.mxu1 %v429_v40 }
  0x5c   : > { %1028 = vmatpush.bf16.xpose.msra.mxu3 %v429_v40  ;;  %1027 = vmatpush.bf16.xpose.msra.mxu2 %v429_v40 }
  0x62   : > { %591 = vmatmul.bf16.vlgmr.msra.gmra.mxu0 %v989_v41  ;;  %616 = vmatmul.bf16.vlgmr.msra.gmra.mxu1 %v994_v42 }
  0x63   : > { %646 = vmatmul.bf16.vlgmr.msra.gmra.mxu3 %v1000_v43  ;;  %636 = vmatmul.bf16.vlgmr.msra.gmra.mxu2 %v998_v50 }
  0x72   : > { %596 = vmatmul.bf16.gmra.mxu0 %v990_v44  ;;  %621 = vmatmul.bf16.gmra.mxu1 %v995_v45 }
  0x73   : > { %651 = vmatmul.bf16.gmra.mxu3 %v1001_v46  ;;  %641 = vmatmul.bf16.gmra.mxu2 %v999_v54 }
  0x82   : > { %601 = vmatmul.bf16.gmra.mxu0 %v991_v47  ;;  %626 = vmatmul.bf16.gmra.mxu1 %v996_v48 }
  0x83   : > { %656 = vmatmul.bf16.gmra.mxu3 %v1002_v49 }
  0x92   : > { %606 = vmatmul.bf16.gmra.mxu0 %v992_v51  ;;  %631 = vmatmul.bf16.gmra.mxu1 %v997_v52 }
  0x93   : > { %661 = vmatmul.bf16.gmra.mxu3 %v1003_v53 }
  0xa2   : > { %611 = vmatmul.bf16.gmra.mxu0 %v993_v55 }
  0xa3   : > { %666 = vmatmul.bf16.gmra.mxu3 %v1004_v56 }
  0xdf   : > { %v592_v57 = vpop.f32.mrf.mxu0  ;;  %v1327_v58 = vpop.f32.mrf.mxu1 }
  0xe0   : > { %v593_v60 = vadd.f32 %v1332_v59, %v592_v57  ;;  %v618_v54 = vadd.f32 %v1332_v59, %v1327_v58 }
  0xe2   : > { %v704_v61 = vmul.f32 0.2, %v593_v60  ;;  %vm672_vm0 = vcmp.ge.f32.partialorder %v593_v60, 0.0  ;;  %v714_v57 = vmul.f32 0.2, %v618_v54  ;;  %vm682_vm12 = vcmp.ge.f32.partialorder %v618_v54, 0.0 }
  0xe4   : > { %v1338_v3 = vsel %vm672_vm0, %v593_v60, %v704_v61 }
  0xe6   : > { %v647_v62 = vpop.f32.mrf.mxu3 }
  0xe7   : > { %v594_v63 = vpop.f32.mrf.mxu0  ;;  %v1335_v0 = vpop.f32.mrf.mxu1  ;;  %v648_v4 = vadd.f32 %v1332_v59, %v647_v62 }
  0xe8   : > { %v595_v1 = vadd.f32 %v1332_v59, %v594_v63  ;;  %v620_v55 = vadd.f32 %v1332_v59, %v1335_v0  ;;  %v746_v63 = vsel %vm682_vm12, %v618_v54, %v714_v57 }
  0xe9   : > { %v726_v8 = vmul.f32 0.2, %v648_v4  ;;  %vm694_vm2 = vcmp.ge.f32.partialorder %v648_v4, 0.0 }
  0xea   : > { %v705_v2 = vmul.f32 0.2, %v595_v1  ;;  %vm673_vm1 = vcmp.ge.f32.partialorder %v595_v1, 0.0  ;;  %v715_v60 = vmul.f32 0.2, %v620_v55  ;;  %vm683_vm13 = vcmp.ge.f32.partialorder %v620_v55, 0.0 }
  0xeb   : > { %v1351_v14 = vsel %vm694_vm2, %v648_v4, %v726_v8 }
  0xec   : > { %v1341_v5 = vsel %vm673_vm1, %v595_v1, %v705_v2  ;;  %v747_v1 = vsel %vm683_vm13, %v620_v55, %v715_v60 }
  0xed   : > { %v768_v6 = vpack.c.bf16 %v1341_v5, %v1338_v3  ;;  %v773_v2 = vpack.c.bf16 %v747_v1, %v746_v63  ;;  %v1197_v5 = vmov 0  }
  0xee   : > { %v649_v7 = vpop.f32.mrf.mxu3  ;;  %1080 = vset.pattern.permute.xlu0 %v1197_v5 }
  0xef   : > { %v650_v9 = vadd.f32 %v1332_v59, %v649_v7  ;;  %v597_v10 = vpop.f32.mrf.mxu0  ;;  %v622_v11 = vpop.f32.mrf.mxu1 }
  0xf0   : > { %v598_v13 = vadd.f32 %v1332_v59, %v597_v10  ;;  %v623_v41 = vadd.f32 %v1332_v59, %v622_v11 }
  0xf1   : > { %v727_v12 = vmul.f32 0.2, %v650_v9  ;;  %vm695_vm3 = vcmp.ge.f32.partialorder %v650_v9, 0.0 }
  0xf2   : > { %v706_v17 = vmul.f32 0.2, %v598_v13  ;;  %vm674_vm4 = vcmp.ge.f32.partialorder %v598_v13, 0.0  ;;  %v716_v46 = vmul.f32 0.2, %v623_v41  ;;  %vm684_vm10 = vcmp.ge.f32.partialorder %v623_v41, 0.0 }
  0xf3   : > { %v1353_v15 = vsel %vm695_vm3, %v650_v9, %v727_v12 }
  0xf4   : > { %v779_v16 = vpack.c.bf16 %v1353_v15, %v1351_v14  ;;  %v1358_v23 = vsel %vm674_vm4, %v598_v13, %v706_v17  ;;  %v748_v52 = vsel %vm684_vm10, %v623_v41, %v716_v46 }
  0xf6   : > { %v652_v18 = vpop.f32.mrf.mxu3 }
  0xf7   : > { %v599_v19 = vpop.f32.mrf.mxu0  ;;  %v624_v20 = vpop.f32.mrf.mxu1  ;;  %v653_v24 = vadd.f32 %v1332_v59, %v652_v18 }
  0xf8   : > { %v600_v21 = vadd.f32 %v1332_v59, %v599_v19  ;;  %v625_v42 = vadd.f32 %v1332_v59, %v624_v20 }
  0xf9   : > { %v728_v28 = vmul.f32 0.2, %v653_v24  ;;  %vm696_vm6 = vcmp.ge.f32.partialorder %v653_v24, 0.0 }
  0xfa   : > { %v707_v22 = vmul.f32 0.2, %v600_v21  ;;  %vm675_vm5 = vcmp.ge.f32.partialorder %v600_v21, 0.0  ;;  %v717_v47 = vmul.f32 0.2, %v625_v42  ;;  %vm685_vm11 = vcmp.ge.f32.partialorder %v625_v42, 0.0 }
  0xfb   : > { %v1369_v34 = vsel %vm696_vm6, %v653_v24, %v728_v28 }
  0xfc   : > { %v1361_v25 = vsel %vm675_vm5, %v600_v21, %v707_v22  ;;  %v749_v53 = vsel %vm685_vm11, %v625_v42, %v717_v47 }
  0xfd   : > { %v769_v26 = vpack.c.bf16 %v1361_v25, %v1358_v23  ;;  %v774_v56 = vpack.c.bf16 %v749_v53, %v748_v52  ;;  %v1083_v23 = vld [vmem:[%s390_s27] ss:$0 sm:$0xff] }
  0xfe   : > { %v654_v27 = vpop.f32.mrf.mxu3 }
  0xff   : > { %v655_v29 = vadd.f32 %v1332_v59, %v654_v27  ;;  %v1366_v30 = vpop.f32.mrf.mxu0  ;;  %v627_v31 = vpop.f32.mrf.mxu1 }
 0x100   : > { %v628_v33 = vadd.f32 %v1332_v59, %v627_v31 }
 0x101   : > { %v729_v32 = vmul.f32 0.2, %v655_v29  ;;  %vm697_vm7 = vcmp.ge.f32.partialorder %v655_v29, 0.0 }
 0x102   : > { %v718_v37 = vmul.f32 0.2, %v628_v33  ;;  %vm686_vm8 = vcmp.ge.f32.partialorder %v628_v33, 0.0 }
 0x103   : > { %v1371_v35 = vsel %vm697_vm7, %v655_v29, %v729_v32  ;;  %v1394_v29 = vpop.f32.mrf.mxu2 }
 0x104   : > { %v780_v36 = vpack.c.bf16 %v1371_v35, %v1369_v34  ;;  %v750_v45 = vsel %vm686_vm8, %v628_v33, %v718_v37  ;;  %v448_v34 = vld [vmem:[%s1474_s9] sm:$0xff] }
 0x105   : > { %v449_v35 = vld [vmem:[%s1473_s8] sm:$0xff] }
 0x106   : > { %v1375_v38 = vpop.f32.mrf.mxu3 }
 0x107   : > { %v1377_v39 = vpop.f32.mrf.mxu0  ;;  %v629_v40 = vpop.f32.mrf.mxu1  ;;  %v658_v55 = vadd.f32 %v1332_v59, %v1375_v38  ;;  %v440_v38 = vstv %s439_s29 }
 0x108   : > { %v630_v43 = vadd.f32 %v1332_v59, %v629_v40  ;;  %v603_v40 = vadd.f32 %v1332_v59, %v1366_v30  ;;  %v605_v41 = vadd.f32 %v1332_v59, %v1377_v39  ;;  %vm1416_vm10 = vcmp.eq.s32.totalorder %v440_v38, 1 }
 0x109   : > { %v450_v3 = vsel %vm1416_vm10, %v448_v34, %v449_v35 }
 0x10a   : > { %v719_v44 = vmul.f32 0.2, %v630_v43  ;;  %vm687_vm9 = vcmp.ge.f32.partialorder %v630_v43, 0.0  ;;  %vm676_vm5 = vcmp.ge.f32.partialorder %v603_v40, 0.0  ;;  %vm677_vm6 = vcmp.ge.f32.partialorder %v605_v41, 0.0  ;;  %786 = vperm.xlu0 %1080, %v450_v3  }
 0x10b   : > { %v639_v52 = vpop.f32.mrf.mxu2 }
 0x10c   : > { %v751_v48 = vsel %vm687_vm9, %v630_v43, %v719_v44  ;;  %vm698_vm9 = vcmp.ge.f32.partialorder %v658_v55, 0.0 }
 0x10d   : > { %v775_v49 = vpack.c.bf16 %v751_v48, %v750_v45  ;;  %v708_v48 = vmul.f32 0.2, %v603_v40 }
 0x10e   : > { %v1382_v50 = vpop.f32.mrf.mxu3 }
 0x10f   : > { %v607_v51 = vpop.f32.mrf.mxu0  ;;  %789 = vmatpush.bf16.xpose.msrb.mxu1 %v775_v49  ;;  %v709_v49 = vmul.f32 0.2, %v605_v41  ;;  %v660_v30 = vadd.f32 %v1332_v59, %v1382_v50  ;;  %v740_v53 = vsel %vm676_vm5, %v603_v40, %v708_v48 }
 0x110   : > { %v608_v0 = vadd.f32 %v1332_v59, %v607_v51 }
 0x111   : > { %v741_v54 = vsel %vm677_vm6, %v605_v41, %v709_v49  ;;  %v731_v60 = vmul.f32 0.2, %v660_v30  ;;  %vm699_vm8 = vcmp.ge.f32.partialorder %v660_v30, 0.0 }
 0x112   : > { %v710_v19 = vmul.f32 0.2, %v608_v0  ;;  %vm678_vm0 = vcmp.ge.f32.partialorder %v608_v0, 0.0 }
 0x113   : > { %v763_v63 = vsel %vm699_vm8, %v660_v30, %v731_v60  ;;  %v642_v1 = vpop.f32.mrf.mxu2 }
 0x114   : > { %v742_v31 = vsel %vm678_vm0, %v608_v0, %v710_v19 }
 0x116   : > { %v662_v61 = vpop.f32.mrf.mxu3 }
 0x117   : > { %v609_v62 = vpop.f32.mrf.mxu0  ;;  %790 = vmatpush.bf16.xpose.msrb.mxu1 %v774_v56  ;;  %v663_v42 = vadd.f32 %v1332_v59, %v662_v61  ;;  %v770_v61 = vpack.c.bf16 %v741_v54, %v740_v53 }
 0x118   : > { %v610_v11 = vadd.f32 %v1332_v59, %v609_v62  ;;  %v730_v62 = vmul.f32 0.2, %v658_v55 }
 0x119   : > { %v732_v51 = vmul.f32 0.2, %v663_v42  ;;  %vm700_vm7 = vcmp.ge.f32.partialorder %v663_v42, 0.0 }
 0x11a   : > { %v711_v20 = vmul.f32 0.2, %v610_v11  ;;  %vm679_vm1 = vcmp.ge.f32.partialorder %v610_v11, 0.0  ;;  %v762_v50 = vsel %vm698_vm9, %v658_v55, %v730_v62 }
 0x11b   : > { %v764_v56 = vsel %vm700_vm7, %v663_v42, %v732_v51  ;;  %v644_v25 = vpop.f32.mrf.mxu2 }
 0x11c   : > { %v743_v32 = vsel %vm679_vm1, %v610_v11, %v711_v20 }
 0x11d   : > { %v771_v45 = vpack.c.bf16 %v743_v32, %v742_v31 }
 0x11e   : > { %v664_v4 = vpop.f32.mrf.mxu3 }
 0x11f   : > { %v612_v7 = vpop.f32.mrf.mxu0  ;;  %791 = vmatpush.bf16.xpose.msrb.mxu1 %v773_v2  ;;  %v665_v33 = vadd.f32 %v1332_v59, %v664_v4  ;;  %v781_v2 = vpack.c.bf16 %v763_v63, %v762_v50  ;;  %v437_v4 = vld [vmem:[%s1472_s7] sm:$0xff] }
 0x120   : > { %v613_v8 = vadd.f32 %v1332_v59, %v612_v7  ;;  %v438_v7 = vld [vmem:[%s1471_s6] sm:$0xff] }
 0x121   : > { %v733_v47 = vmul.f32 0.2, %v665_v33  ;;  %vm701_vm4 = vcmp.ge.f32.partialorder %v665_v33, 0.0 }
 0x122   : > { %v712_v58 = vmul.f32 0.2, %v613_v8  ;;  %vm680_vm14 = vcmp.ge.f32.partialorder %v613_v8, 0.0 }
 0x123   : > { %v765_v39 = vsel %vm701_vm4, %v665_v33, %v733_v47 }
 0x124   : > { %v744_v17 = vsel %vm680_vm14, %v613_v8, %v712_v58  ;;  %v782_v57 = vpack.c.bf16 %v765_v39, %v764_v56 }
 0x126   : > { %v667_v9 = vpop.f32.mrf.mxu3 }
 0x127   : > { %v614_v10 = vpop.f32.mrf.mxu0  ;;  %v668_v18 = vadd.f32 %v1332_v59, %v667_v9  ;;  %v643_v9 = vadd.f32 %v1332_v59, %v642_v1 }
 0x128   : > { %v615_v12 = vadd.f32 %v1332_v59, %v614_v10  ;;  %v645_v10 = vadd.f32 %v1332_v59, %v644_v25 }
 0x129   : > { %v734_v27 = vmul.f32 0.2, %v668_v18  ;;  %vm702_vm2 = vcmp.ge.f32.partialorder %v668_v18, 0.0  ;;  %v724_v11 = vmul.f32 0.2, %v643_v9  ;;  %vm692_vm11 = vcmp.ge.f32.partialorder %v643_v9, 0.0 }
 0x12a   : > { %v713_v13 = vmul.f32 0.2, %v615_v12  ;;  %vm681_vm15 = vcmp.ge.f32.partialorder %v615_v12, 0.0  ;;  %vm693_vm12 = vcmp.ge.f32.partialorder %v645_v10, 0.0 }
 0x12b   : > { %v766_v43 = vsel %vm702_vm2, %v668_v18, %v734_v27 }
 0x12c   : > { %v745_v21 = vsel %vm681_vm15, %v615_v12, %v713_v13  ;;  %v632_v12 = vpop.f32.mrf.mxu1  ;;  %v725_v13 = vmul.f32 0.2, %v645_v10 }
 0x12d   : > { %v772_v22 = vpack.c.bf16 %v745_v21, %v744_v17  ;;  %v756_v17 = vsel %vm692_vm11, %v643_v9, %v724_v11 }
 0x12e   : > { %v669_v24 = vpop.f32.mrf.mxu3  ;;  %v757_v18 = vsel %vm693_vm12, %v645_v10, %v725_v13 }
 0x12f   : > { %v670_v28 = vadd.f32 %v1332_v59, %v669_v24  ;;  %792 = vmatpush.bf16.xpose.msrb.mxu1 %v772_v22  ;;  %v778_v19 = vpack.c.bf16 %v757_v18, %v756_v17 }
 0x131   : > { %v735_v37 = vmul.f32 0.2, %v670_v28  ;;  %vm703_vm3 = vcmp.ge.f32.partialorder %v670_v28, 0.0 }
 0x133   : > { %v767_v44 = vsel %vm703_vm3, %v670_v28, %v735_v37 }
 0x134   : > { %v783_v46 = vpack.c.bf16 %v767_v44, %v766_v43  ;;  %v634_v15 = vpop.f32.mrf.mxu1 }
 0x135   : > { %v635_v21 = vadd.f32 %v1332_v59, %v634_v15 }
 0x136   : > { %802 = vmatpush.bf16.xpose.msrb.mxu2 %v783_v46 }
 0x137   : > { %793 = vmatpush.bf16.xpose.msrb.mxu1 %v771_v45  ;;  %vm689_vm0 = vcmp.ge.f32.partialorder %v635_v21, 0.0 }
 0x13e   : > { %803 = vmatpush.bf16.xpose.msrb.mxu2 %v782_v57 }
 0x13f   : > { %794 = vmatpush.bf16.xpose.msrb.mxu1 %v770_v61 }
 0x146   : > { %804 = vmatpush.bf16.xpose.msrb.mxu2 %v781_v2 }
 0x147   : > { %795 = vmatpush.bf16.xpose.msrb.mxu1 %v769_v26  ;;  %v442_v26 = vsel %vm1416_vm10, %v437_v4, %v438_v7 }
 0x148   : > { %v446_v58 = vmul.f32 %v1083_v23, %v442_v26 }
 0x14a   : > { %v447_v0 = vpack.c.bf16 %v446_v58, %v446_v58 }
 0x14e   : > { %805 = vmatpush.bf16.xpose.msrb.mxu2 %v780_v36  ;;  %v640_v36 = vadd.f32 %v1332_v59, %v639_v52 }
 0x14f   : > { %796 = vmatpush.bf16.xpose.msrb.mxu1 %v768_v6  ;;  %v638_v6 = vadd.f32 %v1332_v59, %v1394_v29  ;;  %v721_v29 = vmul.f32 0.2, %v635_v21 }
 0x150   : > { %v723_v14 = vmul.f32 0.2, %v640_v36  ;;  %vm691_vm14 = vcmp.ge.f32.partialorder %v640_v36, 0.0 }
 0x151   : > { %v722_v20 = vmul.f32 0.2, %v638_v6  ;;  %vm690_vm13 = vcmp.ge.f32.partialorder %v638_v6, 0.0  ;;  %v753_v32 = vsel %vm689_vm0, %v635_v21, %v721_v29 }
 0x152   : > { %v755_v24 = vsel %vm691_vm14, %v640_v36, %v723_v14 }
 0x153   : > { %v754_v22 = vsel %vm690_vm13, %v638_v6, %v722_v20 }
 0x154   : > { %v777_v27 = vpack.c.bf16 %v755_v24, %v754_v22 }
 0x156   : > { %806 = vmatpush.bf16.xpose.msrb.mxu2 %v779_v16  ;;  %797 = vmatmul.bf16.vlgmr.msrb.gmra.mxu1 %v447_v0  ;;  %v633_v16 = vadd.f32 %v1332_v59, %v632_v12 }
 0x158   : > { %v720_v28 = vmul.f32 0.2, %v633_v16  ;;  %vm688_vm15 = vcmp.ge.f32.partialorder %v633_v16, 0.0 }
 0x15a   : > { %v752_v31 = vsel %vm688_vm15, %v633_v16, %v720_v28 }
 0x15b   : > { %v776_v33 = vpack.c.bf16 %v753_v32, %v752_v31 }
 0x15e   : > { %807 = vmatpush.bf16.xpose.msrb.mxu2 %v778_v19 }
 0x166   : > { %808 = vmatpush.bf16.xpose.msrb.mxu2 %v777_v27 }
 0x16e   : > { %809 = vmatpush.bf16.xpose.msrb.mxu2 %v776_v33 }
 0x175   : > { %810 = vmatmul.bf16.vlgmr.msrb.gmra.mxu2 %v447_v0 }
 0x17c   : > { %v787_v37 = vpop.permute.xlu0 %786 }
 0x1d3   : > { %v798_v40 = vpop.f32.mrf.mxu1 }
 0x1d4   : > { %v799_v59 = vadd.f32 %v798_v40, %v787_v37 }
 0x1d6   : > { %815 = vst [vmem:[%s386_s26] sm:$0xff] %v799_v59 }
 0x1db   : > { %v800_v41 = vpop.f32.mrf.mxu1 }
 0x1f8   : > { %v811_v42 = vpop.f32.mrf.mxu2 }
 0x1f9   : > { %v812_v43 = vadd.f32 %v811_v42, %v787_v37 }
 0x1fb   : > { %816 = vst [vmem:[%s386_s26 + $0x8] sm:$0xff] %v812_v43 }
 0x200   : > { %v813_v44 = vpop.f32.mrf.mxu2 }
 0x201 PF: > { %s30_s19 = sadd.s32 1, %s1188_s19   ;;  %s1480_s17 = smov %s1184_s18 }
 0x202   : > { %p27_p9 = scmp.ge.s32.totalorder %s30_s19, 8   ;;  %s1481_s18 = smov %s1483_s20 }
 0x204   :  { %29 = sbr.rel (!%p27_p9) target bundleno = 9 (0x9), region = 95 }
 0x209   :  { %847 = vsyncpa [#allocation5], 1 }
 0x20a   :  { %849 = vsyncpa [#allocation5 + $0x1], 1 }
 0x20b   :  { %850 = vsyncpa [#allocation7], 1 }

// kernel: _lambda_.2
= control target key start
LH: loop header
LB: loop body
LE: loop exit
PB: predicated region body
PF: predicated region fallthrough
CT: control target
= control target key end

     0   :  { %21 = vsyncpa [#allocation3], 0  ;;  %s1211_s0 = inlined_call_operand.vmem [shape: f32[8,128], index: 0, kind: input, shape index: {}]   ;;  %s1212_s1 = inlined_call_operand.hbm [shape: f32[128,128], index: 1, kind: input, shape index: {}]   ;;  %s1213_s2 = inlined_call_operand.vmem [shape: f32[1,128], index: 2, kind: input, shape index: {}]   ;;  %s1214_s3 = inlined_call_operand.hbm [shape: f32[128,128], index: 3, kind: input, shape index: {}]   ;;  %s1215_s4 = inlined_call_operand.vmem [shape: f32[1,128], index: 4, kind: input, shape index: {}]   ;;  %s1216_s5 = inlined_call_operand.hbm [shape: f32[128,128], index: 5, kind: input, shape index: {}]   ;;  %s1217_s6 = inlined_call_operand.hbm [shape: f32[128,128], index: 6, kind: input, shape index: {}]   ;;  %s1218_s7 = inlined_call_operand.vmem [shape: f32[1,128], index: 7, kind: input, shape index: {}]   ;;  %s1219_s8 = inlined_call_operand.hbm [shape: f32[128,128], index: 8, kind: input, shape index: {}]   ;;  %s1220_s9 = inlined_call_operand.vmem [shape: f32[1,128], index: 9, kind: input, shape index: {}]   ;;  %s1221_s10 = inlined_call_operand.hbm [shape: f32[128,128], index: 10, kind: input, shape index: {}]   ;;  %s1222_s11 = inlined_call_operand.vmem [shape: f32[1,128], index: 11, kind: input, shape index: {}]   ;;  %s1223_s12 = inlined_call_operand.hbm [shape: f32[128,128], index: 12, kind: input, shape index: {}]   ;;  %s1224_s13 = inlined_call_operand.vmem [shape: f32[1,128], index: 13, kind: input, shape index: {}]   ;;  %s1225_s14 = inlined_call_operand.vmem [shape: f32[6,1,128], index: 14, kind: output, shape index: {0}]   ;;  %s1226_s15 = inlined_call_operand.vmem [shape: f32[6,1,128], index: 15, kind: output, shape index: {1}]  }
   0x1   :  { %22 = vsyncpa [#allocation5], 0 }
   0x2   :  { %23 = vsyncpa [#allocation8], 0 }
   0x3   :  { %24 = vsyncpa [#allocation11], 0  ;;  %s46_s20 = sshll.u32 %s1214_s3, 4  ;;  %s904_s21 = smov [#allocation4]   ;;  %s47_s20 = int_to_ptr.hbm [resolvable:$true] %s46_s20 }
   0x4   :  { %s48_s22 = sshll.u32 %s904_s21, 4  ;;  %s74_s25 = sshll.u32 %s1217_s6, 4  ;;  %s49_s22 = int_to_ptr.vmem [resolvable:$true] %s48_s22  ;;  %s75_s25 = int_to_ptr.hbm [resolvable:$true] %s74_s25 }
   0x5   :  { %s905_s26 = smov 128   ;;  %s906_s27 = smov 8  }
   0x6   :  { %54 = dma.hbm_to_vmem [thread:$0]  %s47_s20, 2048, %s49_s22, [#allocation5], %s905_s26, %s905_s26, %s906_s27  }
   0x7   :  { %s907_s28 = smov [#allocation7]   ;;  %s104_s3 = sshll.u32 %s1221_s10, 4  ;;  %s105_s3 = int_to_ptr.hbm [resolvable:$true] %s104_s3 }
   0x8   :  { %s76_s29 = sshll.u32 %s907_s28, 4  ;;  %s31_s18 = sshll.u32 %s1212_s1, 4  ;;  %s77_s29 = int_to_ptr.vmem [resolvable:$true] %s76_s29  ;;  %s32_s18 = int_to_ptr.hbm [resolvable:$true] %s31_s18 }
   0x9   :  { %82 = dma.hbm_to_vmem [thread:$0]  %s75_s25, 2048, %s77_s29, [#allocation8], %s905_s26, %s905_s26, %s906_s27  }
   0xa   :  { %s908_s19 = smov [#allocation10]   ;;  %s909_s20 = smov [#allocation2]  }
   0xb   :  { %s106_s21 = sshll.u32 %s908_s19, 4  ;;  %s33_s10 = sshll.u32 %s909_s20, 4  ;;  %s107_s21 = int_to_ptr.vmem [resolvable:$true] %s106_s21  ;;  %s34_s10 = int_to_ptr.vmem [resolvable:$true] %s33_s10 }
   0xc   :  { %112 = dma.hbm_to_vmem [thread:$0]  %s105_s3, 2048, %s107_s21, [#allocation11], %s905_s26, %s905_s26, %s906_s27  }
   0xd   :  { %s61_s24 = sshll.u32 %s1216_s5, 4  ;;  %s89_s28 = sshll.u32 %s1219_s8, 4  ;;  %s62_s24 = int_to_ptr.hbm [resolvable:$true] %s61_s24  ;;  %s90_s28 = int_to_ptr.hbm [resolvable:$true] %s89_s28 }
   0xe   :  { %39 = dma.hbm_to_vmem [thread:$0]  %s32_s18, 2048, %s34_s10, [#allocation3], %s905_s26, %s905_s26, %s906_s27  }
   0xf   :  { %s910_s29 = smov [#allocation6]   ;;  %s911_s16 = smov [#allocation9]  }
  0x10   :  { %s63_s30 = sshll.u32 %s910_s29, 4  ;;  %s91_s5 = sshll.u32 %s911_s16, 4  ;;  %s64_s30 = int_to_ptr.vmem [resolvable:$true] %s63_s30  ;;  %s92_s5 = int_to_ptr.vmem [resolvable:$true] %s91_s5 }
  0x11   :  { %69 = dma.hbm_to_vmem [thread:$0]  %s62_s24, 2048, %s64_s30, [#allocation5], %s905_s26, %s905_s26, %s906_s27  }
  0x12   :  { %s119_s17 = sshll.u32 %s1223_s12, 4  ;;  %s912_s8 = smov [#allocation12]   ;;  %s120_s17 = int_to_ptr.hbm [resolvable:$true] %s119_s17 }
  0x13   :  { %97 = dma.hbm_to_vmem [thread:$0]  %s90_s28, 2048, %s92_s5, [#allocation8], %s905_s26, %s905_s26, %s906_s27  }
  0x14   :  { %s121_s18 = sshll.u32 %s912_s8, 4  ;;  %s122_s18 = int_to_ptr.vmem [resolvable:$true] %s121_s18 }
  0x15   :  { %127 = dma.hbm_to_vmem [thread:$0]  %s120_s17, 2048, %s122_s18, [#allocation11], %s905_s26, %s905_s26, %s906_s27  }
  0x16   :  { %896 = dma.done.wait [#allocation3], 2048  }
  0x17   :  { %897 = vsyncadd [#allocation3], 4294965248 }
  0x18   :  { %898 = dma.done.wait [#allocation5], 4096  }
  0x19   :  { %899 = vsyncadd [#allocation5], 4294963200 }
  0x1a   :  { %900 = dma.done.wait [#allocation8], 4096  }
  0x1b   :  { %901 = vsyncadd [#allocation8], 4294963200 }
  0x1c   :  { %902 = dma.done.wait [#allocation11], 4096  }
  0x1d   :  { %903 = vsyncadd [#allocation11], 4294963200  ;;  %v1038_v0 = vld [vmem:[%s1211_s0] sm:$0xff]  ;;  %v190_v1 = vld [vmem:[#allocation2 + $0x78] sm:$0xff] }
  0x1e   :  { %v189_v2 = vld [vmem:[#allocation2 + $0x70] sm:$0xff]  ;;  %v159_v3 = vmul.f32 %v1038_v0, %v1038_v0  ;;  %195 = vmatpush.msra.mxu0 %v190_v1  ;;  %v188_v4 = vld [vmem:[#allocation2 + $0x68] sm:$0xff]  ;;  %v187_v5 = vld [vmem:[#allocation2 + $0x60] sm:$0xff] }
  0x1f   :  { %v186_v6 = vld [vmem:[#allocation2 + $0x58] sm:$0xff]  ;;  %v185_v7 = vld [vmem:[#allocation2 + $0x50] sm:$0xff]  ;;  %v184_v8 = vld [vmem:[#allocation2 + $0x48] sm:$0xff] }
  0x20   :  { %160 = vadd.xlane.f32.xlu0 %v159_v3  ;;  %196 = vmatpush.msra.mxu0 %v189_v2  ;;  %v183_v9 = vld [vmem:[#allocation2 + $0x40] sm:$0xff]  ;;  %v182_v10 = vld [vmem:[#allocation2 + $0x38] sm:$0xff]  ;;  %v181_v11 = vld [vmem:[#allocation2 + $0x30] sm:$0xff] }
  0x21   :  { %v180_v12 = vld [vmem:[#allocation2 + $0x28] sm:$0xff]  ;;  %v179_v13 = vld [vmem:[#allocation2 + $0x20] sm:$0xff]  ;;  %v178_v14 = vld [vmem:[#allocation2 + $0x18] sm:$0xff] }
  0x22   :  { %197 = vmatpush.msra.mxu0 %v188_v4  ;;  %v177_v15 = vld [vmem:[#allocation2 + $0x10] sm:$0xff]  ;;  %v176_v16 = vld [vmem:[#allocation2 + $0x8] sm:$0xff]  ;;  %v175_v17 = vld [vmem:[#allocation2] sm:$0xff] }
  0x23   :  { %v233_v18 = vld [vmem:[#allocation4 + $0x78] sm:$0xff]  ;;  %v232_v19 = vld [vmem:[#allocation4 + $0x70] sm:$0xff]  ;;  %v231_v20 = vld [vmem:[#allocation4 + $0x68] sm:$0xff] }
  0x24   :  { %198 = vmatpush.msra.mxu0 %v187_v5  ;;  %238 = vmatpush.msra.mxu1 %v233_v18  ;;  %v230_v21 = vld [vmem:[#allocation4 + $0x60] sm:$0xff]  ;;  %v229_v22 = vld [vmem:[#allocation4 + $0x58] sm:$0xff]  ;;  %v228_v25 = vld [vmem:[#allocation4 + $0x50] sm:$0xff] }
  0x25   :  { %v227_v27 = vld [vmem:[#allocation4 + $0x48] sm:$0xff]  ;;  %v226_v28 = vld [vmem:[#allocation4 + $0x40] sm:$0xff]  ;;  %v225_v29 = vld [vmem:[#allocation4 + $0x38] sm:$0xff] }
  0x26   :  { %199 = vmatpush.msra.mxu0 %v186_v6  ;;  %239 = vmatpush.msra.mxu1 %v232_v19  ;;  %v224_v30 = vld [vmem:[#allocation4 + $0x30] sm:$0xff]  ;;  %v223_v32 = vld [vmem:[#allocation4 + $0x28] sm:$0xff]  ;;  %v222_v34 = vld [vmem:[#allocation4 + $0x20] sm:$0xff] }
  0x27   :  { %v221_v36 = vld [vmem:[#allocation4 + $0x18] sm:$0xff]  ;;  %v220_v42 = vld [vmem:[#allocation4 + $0x10] sm:$0xff]  ;;  %v219_v43 = vld [vmem:[#allocation4 + $0x8] sm:$0xff] }
  0x28   :  { %200 = vmatpush.msra.mxu0 %v185_v7  ;;  %240 = vmatpush.msra.mxu1 %v231_v20  ;;  %v218_v44 = vld [vmem:[#allocation4] sm:$0xff]  ;;  %v276_v45 = vld [vmem:[#allocation7 + $0x78] sm:$0xff]  ;;  %v275_v47 = vld [vmem:[#allocation7 + $0x70] sm:$0xff] }
  0x29   :  { %v316_v46 = vld [vmem:[#allocation6 + $0x78] sm:$0xff]  ;;  %281 = vmatpush.msra.mxu2 %v276_v45  ;;  %v315_v48 = vld [vmem:[#allocation6 + $0x70] sm:$0xff]  ;;  %v274_v49 = vld [vmem:[#allocation7 + $0x68] sm:$0xff] }
  0x2a   :  { %201 = vmatpush.msra.mxu0 %v184_v8  ;;  %241 = vmatpush.msra.mxu1 %v230_v21  ;;  %v314_v50 = vld [vmem:[#allocation6 + $0x68] sm:$0xff]  ;;  %v273_v51 = vld [vmem:[#allocation7 + $0x60] sm:$0xff]  ;;  %v272_v53 = vld [vmem:[#allocation7 + $0x58] sm:$0xff] }
  0x2b   :  { %317 = vmatpush.msra.mxu3 %v316_v46  ;;  %282 = vmatpush.msra.mxu2 %v275_v47  ;;  %v313_v52 = vld [vmem:[#allocation6 + $0x60] sm:$0xff]  ;;  %v312_v54 = vld [vmem:[#allocation6 + $0x58] sm:$0xff]  ;;  %v271_v55 = vld [vmem:[#allocation7 + $0x50] sm:$0xff] }
  0x2c   :  { %202 = vmatpush.msra.mxu0 %v183_v9  ;;  %242 = vmatpush.msra.mxu1 %v229_v22  ;;  %v311_v56 = vld [vmem:[#allocation6 + $0x50] sm:$0xff]  ;;  %v270_v57 = vld [vmem:[#allocation7 + $0x48] sm:$0xff]  ;;  %v269_v59 = vld [vmem:[#allocation7 + $0x40] sm:$0xff] }
  0x2d   :  { %318 = vmatpush.msra.mxu3 %v315_v48  ;;  %283 = vmatpush.msra.mxu2 %v274_v49  ;;  %v310_v58 = vld [vmem:[#allocation6 + $0x48] sm:$0xff]  ;;  %v309_v60 = vld [vmem:[#allocation6 + $0x40] sm:$0xff]  ;;  %v268_v61 = vld [vmem:[#allocation7 + $0x38] sm:$0xff] }
  0x2e   :  { %203 = vmatpush.msra.mxu0 %v182_v10  ;;  %243 = vmatpush.msra.mxu1 %v228_v25  ;;  %v308_v62 = vld [vmem:[#allocation6 + $0x38] sm:$0xff]  ;;  %v267_v63 = vld [vmem:[#allocation7 + $0x30] sm:$0xff]  ;;  %v266_v1 = vld [vmem:[#allocation7 + $0x28] sm:$0xff] }
  0x2f   :  { %319 = vmatpush.msra.mxu3 %v314_v50  ;;  %284 = vmatpush.msra.mxu2 %v273_v51  ;;  %v306_v2 = vld [vmem:[#allocation6 + $0x28] sm:$0xff]  ;;  %v265_v3 = vld [vmem:[#allocation7 + $0x20] sm:$0xff]  ;;  %v264_v5 = vld [vmem:[#allocation7 + $0x18] sm:$0xff] }
  0x30   :  { %204 = vmatpush.msra.mxu0 %v181_v11  ;;  %244 = vmatpush.msra.mxu1 %v227_v27  ;;  %v305_v4 = vld [vmem:[#allocation6 + $0x20] sm:$0xff]  ;;  %v304_v6 = vld [vmem:[#allocation6 + $0x18] sm:$0xff]  ;;  %v354_v19 = vld [vmem:[#allocation9 + $0x70] sm:$0xff] }
  0x31   :  { %320 = vmatpush.msra.mxu3 %v313_v52  ;;  %285 = vmatpush.msra.mxu2 %v272_v53  ;;  %v716_v7 = vld [vmem:[%s1213_s2] ss:$0 sm:$0xff]  ;;  %v355_v18 = vld [vmem:[#allocation9 + $0x78] sm:$0xff]  ;;  %v353_v20 = vld [vmem:[#allocation9 + $0x68] sm:$0xff] }
  0x32   :  { %205 = vmatpush.msra.mxu0 %v180_v12  ;;  %245 = vmatpush.msra.mxu1 %v226_v28  ;;  %v263_v12 = vld [vmem:[#allocation7 + $0x10] sm:$0xff]  ;;  %v352_v21 = vld [vmem:[#allocation9 + $0x60] sm:$0xff]  ;;  %v351_v22 = vld [vmem:[#allocation9 + $0x58] sm:$0xff] }
  0x33   :  { %321 = vmatpush.msra.mxu3 %v312_v54  ;;  %286 = vmatpush.msra.mxu2 %v271_v55  ;;  %v348_v25 = vld [vmem:[#allocation9 + $0x40] sm:$0xff]  ;;  %v346_v27 = vld [vmem:[#allocation9 + $0x30] sm:$0xff]  ;;  %v345_v28 = vld [vmem:[#allocation9 + $0x28] sm:$0xff] }
  0x34   :  { %206 = vmatpush.msra.mxu0 %v179_v13  ;;  %246 = vmatpush.msra.mxu1 %v225_v29  ;;  %v303_v13 = vld [vmem:[#allocation6 + $0x10] sm:$0xff]  ;;  %v344_v29 = vld [vmem:[#allocation9 + $0x20] sm:$0xff]  ;;  %v1076_v47 = vld [vmem:[#allocation10 + $0x58] sm:$0xff] }
  0x35   :  { %322 = vmatpush.msra.mxu3 %v311_v56  ;;  %287 = vmatpush.msra.mxu2 %v270_v57  ;;  %v1068_v45 = vld [vmem:[#allocation10 + $0x60] sm:$0xff]  ;;  %v1084_v49 = vld [vmem:[#allocation10 + $0x50] sm:$0xff]  ;;  %v1092_v51 = vld [vmem:[#allocation10 + $0x48] sm:$0xff] }
  0x36   :  { %207 = vmatpush.msra.mxu0 %v178_v14  ;;  %247 = vmatpush.msra.mxu1 %v224_v30  ;;  %v262_v14 = vld [vmem:[#allocation7 + $0x8] sm:$0xff]  ;;  %v717_v30 = vld [vmem:[%s1215_s4] ss:$0 sm:$0xff]  ;;  %v1108_v55 = vld [vmem:[#allocation10 + $0x38] sm:$0xff] }
  0x37   :  { %323 = vmatpush.msra.mxu3 %v310_v58  ;;  %288 = vmatpush.msra.mxu2 %v269_v59  ;;  %v1100_v53 = vld [vmem:[#allocation10 + $0x40] sm:$0xff]  ;;  %v1116_v57 = vld [vmem:[#allocation10 + $0x30] sm:$0xff]  ;;  %v1124_v59 = vld [vmem:[#allocation10 + $0x28] sm:$0xff] }
  0x38   :  { %208 = vmatpush.msra.mxu0 %v177_v15  ;;  %248 = vmatpush.msra.mxu1 %v223_v32  ;;  %v302_v15 = vld [vmem:[#allocation6 + $0x8] sm:$0xff] }
  0x39   :  { %324 = vmatpush.msra.mxu3 %v309_v60  ;;  %289 = vmatpush.msra.mxu2 %v268_v61  ;;  %v1132_v61 = vld [vmem:[#allocation10 + $0x20] sm:$0xff] }
  0x3a   :  { %209 = vmatpush.msra.mxu0 %v176_v16  ;;  %249 = vmatpush.msra.mxu1 %v222_v34  ;;  %v261_v16 = vld [vmem:[#allocation7] sm:$0xff] }
  0x3b   :  { %325 = vmatpush.msra.mxu3 %v308_v62  ;;  %290 = vmatpush.msra.mxu2 %v267_v63  ;;  %v718_v63 = vld [vmem:[%s1218_s7] ss:$0 sm:$0xff] }
  0x3c   :  { %210 = vmatpush.msra.mxu0 %v175_v17  ;;  %250 = vmatpush.msra.mxu1 %v221_v36  ;;  %v301_v17 = vld [vmem:[#allocation6] sm:$0xff]  ;;  %v342_v36 = vld [vmem:[#allocation9 + $0x10] sm:$0xff] }
  0x3d   :  { %291 = vmatpush.msra.mxu2 %v266_v1  ;;  %v466_v1 = vld [vmem:[#allocation12 + $0x18] sm:$0xff] }
  0x3e   :  { %251 = vmatpush.msra.mxu1 %v220_v42  ;;  %360 = vmatpush.msrb.mxu0 %v355_v18  ;;  %v1057_v42 = vld [vmem:[#allocation12 + $0x70] sm:$0xff] }
  0x3f   :  { %292 = vmatpush.msra.mxu2 %v265_v3  ;;  %v425_v3 = vld [vmem:[#allocation10 + $0x10] sm:$0xff] }
  0x40   :  { %252 = vmatpush.msra.mxu1 %v219_v43  ;;  %361 = vmatpush.msrb.mxu0 %v354_v19  ;;  %v1060_v43 = vld [vmem:[#allocation10 + $0x68] sm:$0xff] }
  0x41   :  { %293 = vmatpush.msra.mxu2 %v264_v5 }
  0x42   :  { %253 = vmatpush.msra.mxu1 %v218_v44  ;;  %362 = vmatpush.msrb.mxu0 %v353_v20  ;;  %v1062_v44 = vld [vmem:[#allocation12 + $0x68] sm:$0xff] }
  0x43   :  { %294 = vmatpush.msra.mxu2 %v263_v12  ;;  %v423_v12 = vld [vmem:[#allocation10] sm:$0xff] }
  0x44   :  { %380 = vmatpush.msrb.mxu1 %v316_v46  ;;  %363 = vmatpush.msrb.mxu0 %v352_v21  ;;  %v1070_v46 = vld [vmem:[#allocation12 + $0x60] sm:$0xff] }
  0x45   :  { %295 = vmatpush.msra.mxu2 %v262_v14  ;;  %v719_v14 = vld [vmem:[%s1220_s9] ss:$0 sm:$0xff] }
  0x46   :  { %381 = vmatpush.msrb.mxu1 %v315_v48  ;;  %364 = vmatpush.msrb.mxu0 %v351_v22  ;;  %v1078_v48 = vld [vmem:[#allocation12 + $0x58] sm:$0xff] }
  0x47   :  { %296 = vmatpush.msra.mxu2 %v261_v16 }
  0x48   :  { %382 = vmatpush.msrb.mxu1 %v314_v50  ;;  %v1086_v50 = vld [vmem:[#allocation12 + $0x50] sm:$0xff] }
  0x49   :  { %403 = vmatpush.msrb.mxu2 %v355_v18 }
  0x4a   :  { %383 = vmatpush.msrb.mxu1 %v313_v52  ;;  %v1094_v52 = vld [vmem:[#allocation12 + $0x48] sm:$0xff] }
  0x4b   :  { %404 = vmatpush.msrb.mxu2 %v354_v19 }
  0x4c   :  { %384 = vmatpush.msrb.mxu1 %v312_v54  ;;  %v1102_v54 = vld [vmem:[#allocation12 + $0x40] sm:$0xff] }
  0x4d   :  { %405 = vmatpush.msrb.mxu2 %v353_v20 }
  0x4e   :  { %385 = vmatpush.msrb.mxu1 %v311_v56  ;;  %v1110_v56 = vld [vmem:[#allocation12 + $0x38] sm:$0xff] }
  0x4f   :  { %406 = vmatpush.msrb.mxu2 %v352_v21  ;;  %v720_v21 = vld [vmem:[%s1224_s13] ss:$0 sm:$0xff] }
  0x50   :  { %386 = vmatpush.msrb.mxu1 %v310_v58  ;;  %v1118_v58 = vld [vmem:[#allocation12 + $0x30] sm:$0xff] }
  0x51   :  { %407 = vmatpush.msrb.mxu2 %v351_v22  ;;  %v721_v22 = vld [vmem:[%s1222_s11] ss:$0 sm:$0xff] }
  0x52   :  { %387 = vmatpush.msrb.mxu1 %v309_v60  ;;  %v1126_v60 = vld [vmem:[#allocation12 + $0x28] sm:$0xff] }
  0x54   :  { %388 = vmatpush.msrb.mxu1 %v308_v62  ;;  %v1134_v62 = vld [vmem:[#allocation12 + $0x20] sm:$0xff] }
  0x93   :  { %v161_v23 = vpop.xlane.xlu0 %160 }
  0x94   :  { %v162_v24 = vmul.f32 0.03125, %v161_v23  ;;  %v350_v23 = vld [vmem:[#allocation9 + $0x50] sm:$0xff] }
  0x95   :  { %365 = vmatpush.msrb.mxu0 %v350_v23  ;;  %408 = vmatpush.msrb.mxu2 %v350_v23 }
  0x96   :  { %v163_v26 = vadd.f32 1e-08, %v162_v24  ;;  %v349_v24 = vld [vmem:[#allocation9 + $0x48] sm:$0xff] }
  0x97   :  { %366 = vmatpush.msrb.mxu0 %v349_v24  ;;  %409 = vmatpush.msrb.mxu2 %v349_v24 }
  0x98   :  { %726 = vrsqrt.f32 %v163_v26  ;;  %vm170_vm1 = vweird.f32 %v163_v26 }
  0x99   :  { %367 = vmatpush.msrb.mxu0 %v348_v25  ;;  %410 = vmatpush.msrb.mxu2 %v348_v25 }
  0x9e   :  { %v727_v31 = vpop.eup %726 }
  0x9f   :  { %v165_v33 = vmul.f32 %v727_v31, %v163_v26  ;;  %vm171_vm0 = vweird.f32 %v727_v31  ;;  %v347_v26 = vld [vmem:[#allocation9 + $0x38] sm:$0xff] }
  0xa0   :  { %vm172_vm2 = vmor %vm170_vm1, %vm171_vm0  ;;  %368 = vmatpush.msrb.mxu0 %v347_v26  ;;  %411 = vmatpush.msrb.mxu2 %v347_v26 }
  0xa1   :  { %v166_v35 = vmul.f32 %v727_v31, %v165_v33 }
  0xa2   :  { %369 = vmatpush.msrb.mxu0 %v346_v27  ;;  %412 = vmatpush.msrb.mxu2 %v346_v27  ;;  %v722_v27 = vld [vmem:[%s1222_s11] ss:$0 sm:$0xff] }
  0xa3   :  { %v167_v37 = vmul.f32 0.5, %v166_v35  ;;  %v343_v35 = vld [vmem:[#allocation9 + $0x18] sm:$0xff] }
  0xa4   :  { %370 = vmatpush.msrb.mxu0 %v345_v28  ;;  %413 = vmatpush.msrb.mxu2 %v345_v28 }
  0xa5   :  { %v168_v38 = vsub.f32 1.5, %v167_v37  ;;  %v341_v37 = vld [vmem:[#allocation9 + $0x8] sm:$0xff] }
  0xa6   :  { %371 = vmatpush.msrb.mxu0 %v344_v29  ;;  %414 = vmatpush.msrb.mxu2 %v344_v29 }
  0xa7   :  { %v169_v39 = vmul.f32 %v727_v31, %v168_v38  ;;  %v340_v38 = vld [vmem:[#allocation9] sm:$0xff] }
  0xa8   :  { %372 = vmatpush.msrb.mxu0 %v343_v35  ;;  %415 = vmatpush.msrb.mxu2 %v343_v35  ;;  %v724_v35 = vld [vmem:[%s1224_s13] ss:$0 sm:$0xff] }
  0xa9   :  { %v173_v40 = vsel %vm172_vm2, %v727_v31, %v169_v39  ;;  %v1049_v39 = vld [vmem:[#allocation10 + $0x78] sm:$0xff] }
  0xaa   :  { %v174_v41 = vmul.f32 %v173_v40, %v1038_v0  ;;  %v307_v0 = vld [vmem:[#allocation6 + $0x30] sm:$0xff]  ;;  %373 = vmatpush.msrb.mxu0 %v342_v36  ;;  %416 = vmatpush.msrb.mxu2 %v342_v36  ;;  %v1051_v40 = vld [vmem:[#allocation12 + $0x78] sm:$0xff] }
  0xab   :  { %326 = vmatpush.msra.mxu3 %v307_v0  ;;  %389 = vmatpush.msrb.mxu1 %v307_v0  ;;  %v426_v0 = vld [vmem:[#allocation10 + $0x18] sm:$0xff] }
  0xac   :  { %211 = vmatmul.f32.vlgmr.msra.gmra.mxu0 %v174_v41  ;;  %417 = vmatpush.msrb.mxu2 %v341_v37  ;;  %v1053_v41 = vld [vmem:[#allocation10 + $0x70] sm:$0xff] }
  0xad   :  { %327 = vmatpush.msra.mxu3 %v306_v2  ;;  %390 = vmatpush.msrb.mxu1 %v306_v2 }
  0xae   :  { %374 = vmatpush.msrb.mxu0 %v341_v37  ;;  %418 = vmatpush.msrb.mxu2 %v340_v38 }
  0xaf   :  { %328 = vmatpush.msra.mxu3 %v305_v4  ;;  %391 = vmatpush.msrb.mxu1 %v305_v4  ;;  %v465_v4 = vld [vmem:[#allocation12 + $0x10] sm:$0xff] }
  0xb0   :  { %375 = vmatpush.msrb.mxu0 %v340_v38  ;;  %v725_v38 = vld [vmem:[%s1222_s11] ss:$0 sm:$0xff] }
  0xb1   :  { %329 = vmatpush.msra.mxu3 %v304_v6  ;;  %392 = vmatpush.msrb.mxu1 %v304_v6 }
  0xb2   :  { %483 = vmatpush.msra.mxu0 %v1051_v40 }
  0xb3   :  { %330 = vmatpush.msra.mxu3 %v303_v13  ;;  %393 = vmatpush.msrb.mxu1 %v303_v13  ;;  %v463_v13 = vld [vmem:[#allocation12] sm:$0xff] }
  0xb4   :  { %484 = vmatpush.msra.mxu0 %v1057_v42 }
  0xb5   :  { %331 = vmatpush.msra.mxu3 %v302_v15  ;;  %394 = vmatpush.msrb.mxu1 %v302_v15 }
  0xb6   :  { %485 = vmatpush.msra.mxu0 %v1062_v44 }
  0xb7   :  { %332 = vmatpush.msra.mxu3 %v301_v17  ;;  %395 = vmatpush.msrb.mxu1 %v301_v17 }
  0xb8   :  { %486 = vmatpush.msra.mxu0 %v1070_v46 }
  0xb9   :  { %443 = vmatpush.msrb.mxu3 %v1049_v39 }
  0xba   :  { %487 = vmatpush.msra.mxu0 %v1078_v48 }
  0xbb   :  { %444 = vmatpush.msrb.mxu3 %v1053_v41 }
  0xbc   :  { %488 = vmatpush.msra.mxu0 %v1086_v50 }
  0xbd   :  { %445 = vmatpush.msrb.mxu3 %v1060_v43 }
  0xbe   :  { %489 = vmatpush.msra.mxu0 %v1094_v52 }
  0xbf   :  { %446 = vmatpush.msrb.mxu3 %v1068_v45 }
  0xc0   :  { %490 = vmatpush.msra.mxu0 %v1102_v54 }
  0xc1   :  { %447 = vmatpush.msrb.mxu3 %v1076_v47 }
  0xc2   :  { %491 = vmatpush.msra.mxu0 %v1110_v56 }
  0xc3   :  { %448 = vmatpush.msrb.mxu3 %v1084_v49 }
  0xc4   :  { %492 = vmatpush.msra.mxu0 %v1118_v58 }
  0xc5   :  { %449 = vmatpush.msrb.mxu3 %v1092_v51 }
  0xc6   :  { %493 = vmatpush.msra.mxu0 %v1126_v60 }
  0xc7   :  { %450 = vmatpush.msrb.mxu3 %v1100_v53 }
  0xc8   :  { %494 = vmatpush.msra.mxu0 %v1134_v62 }
  0xc9   :  { %451 = vmatpush.msrb.mxu3 %v1108_v55 }
  0xca   :  { %495 = vmatpush.msra.mxu0 %v466_v1 }
  0xcb   :  { %452 = vmatpush.msrb.mxu3 %v1116_v57 }
  0xcc   :  { %496 = vmatpush.msra.mxu0 %v465_v4 }
  0xcd   :  { %453 = vmatpush.msrb.mxu3 %v1124_v59 }
  0xcf   :  { %454 = vmatpush.msrb.mxu3 %v1132_v61 }
  0xd1   :  { %455 = vmatpush.msrb.mxu3 %v426_v0 }
  0xd3   :  { %456 = vmatpush.msrb.mxu3 %v425_v3 }
 0x129   :  { %v212_v8 = vpop.f32.mrf.mxu0 }
 0x12a   :  { %v213_v9 = vadd.f32 %v716_v7, %v212_v8 }
 0x12c   :  { %vm215_vm3 = vcmp.ge.f32.partialorder %v213_v9, 0.0  ;;  %v216_v10 = vmul.f32 0.2, %v213_v9 }
 0x12e   :  { %v217_v11 = vsel %vm215_vm3, %v213_v9, %v216_v10  ;;  %v424_v10 = vld [vmem:[#allocation10 + $0x8] sm:$0xff] }
 0x12f   :  { %254 = vmatmul.f32.vlgmr.msra.gmra.mxu1 %v217_v11  ;;  %v464_v11 = vld [vmem:[#allocation12 + $0x8] sm:$0xff]  ;;  %457 = vmatpush.msrb.mxu3 %v424_v10 }
 0x130   :  { %529 = vmatpush.msra.mxu1 %v1049_v39  ;;  %497 = vmatpush.msra.mxu0 %v464_v11 }
 0x131   :  { %458 = vmatpush.msrb.mxu3 %v423_v12 }
 0x132   :  { %530 = vmatpush.msra.mxu1 %v1053_v41  ;;  %498 = vmatpush.msra.mxu0 %v463_v13 }
 0x134   :  { %531 = vmatpush.msra.mxu1 %v1060_v43 }
 0x136   :  { %532 = vmatpush.msra.mxu1 %v1068_v45 }
 0x138   :  { %533 = vmatpush.msra.mxu1 %v1076_v47 }
 0x13a   :  { %534 = vmatpush.msra.mxu1 %v1084_v49 }
 0x13c   :  { %535 = vmatpush.msra.mxu1 %v1092_v51 }
 0x13e   :  { %536 = vmatpush.msra.mxu1 %v1100_v53 }
 0x140   :  { %537 = vmatpush.msra.mxu1 %v1108_v55 }
 0x142   :  { %538 = vmatpush.msra.mxu1 %v1116_v57 }
 0x144   :  { %539 = vmatpush.msra.mxu1 %v1124_v59 }
 0x146   :  { %540 = vmatpush.msra.mxu1 %v1132_v61 }
 0x148   :  { %541 = vmatpush.msra.mxu1 %v426_v0 }
 0x14a   :  { %542 = vmatpush.msra.mxu1 %v425_v3 }
 0x14c   :  { %543 = vmatpush.msra.mxu1 %v424_v10 }
 0x14e   :  { %544 = vmatpush.msra.mxu1 %v423_v12 }
 0x1ac   :  { %v255_v31 = vpop.f32.mrf.mxu1 }
 0x1ad   :  { %v256_v32 = vadd.f32 %v717_v30, %v255_v31 }
 0x1af   :  { %vm258_vm4 = vcmp.ge.f32.partialorder %v256_v32, 0.0  ;;  %v259_v33 = vmul.f32 0.2, %v256_v32 }
 0x1b1   :  { %v260_v34 = vsel %vm258_vm4, %v256_v32, %v259_v33  ;;  %v723_v32 = vld [vmem:[%s1224_s13] ss:$0 sm:$0xff] }
 0x1b2   :  { %297 = vmatmul.f32.vlgmr.msra.gmra.mxu2 %v260_v34  ;;  %333 = vmatmul.f32.vlgmr.msra.gmra.mxu3 %v260_v34 }
 0x1b3   :  { %569 = vmatpush.msra.mxu2 %v1051_v40  ;;  %617 = vmatpush.msra.mxu3 %v1049_v39 }
 0x1b5   :  { %570 = vmatpush.msra.mxu2 %v1057_v42  ;;  %618 = vmatpush.msra.mxu3 %v1053_v41 }
 0x1b7   :  { %571 = vmatpush.msra.mxu2 %v1062_v44  ;;  %619 = vmatpush.msra.mxu3 %v1060_v43 }
 0x1b9   :  { %572 = vmatpush.msra.mxu2 %v1070_v46  ;;  %620 = vmatpush.msra.mxu3 %v1068_v45 }
 0x1bb   :  { %573 = vmatpush.msra.mxu2 %v1078_v48  ;;  %621 = vmatpush.msra.mxu3 %v1076_v47 }
 0x1bd   :  { %574 = vmatpush.msra.mxu2 %v1086_v50  ;;  %622 = vmatpush.msra.mxu3 %v1084_v49 }
 0x1bf   :  { %575 = vmatpush.msra.mxu2 %v1094_v52  ;;  %623 = vmatpush.msra.mxu3 %v1092_v51 }
 0x1c1   :  { %576 = vmatpush.msra.mxu2 %v1102_v54  ;;  %624 = vmatpush.msra.mxu3 %v1100_v53 }
 0x1c3   :  { %577 = vmatpush.msra.mxu2 %v1110_v56  ;;  %625 = vmatpush.msra.mxu3 %v1108_v55 }
 0x1c5   :  { %578 = vmatpush.msra.mxu2 %v1118_v58  ;;  %626 = vmatpush.msra.mxu3 %v1116_v57 }
 0x1c7   :  { %579 = vmatpush.msra.mxu2 %v1126_v60  ;;  %627 = vmatpush.msra.mxu3 %v1124_v59 }
 0x1c9   :  { %580 = vmatpush.msra.mxu2 %v1134_v62  ;;  %628 = vmatpush.msra.mxu3 %v1132_v61 }
 0x1cb   :  { %581 = vmatpush.msra.mxu2 %v466_v1  ;;  %629 = vmatpush.msra.mxu3 %v426_v0 }
 0x1cd   :  { %582 = vmatpush.msra.mxu2 %v465_v4  ;;  %630 = vmatpush.msra.mxu3 %v425_v3 }
 0x1cf   :  { %583 = vmatpush.msra.mxu2 %v464_v11  ;;  %631 = vmatpush.msra.mxu3 %v424_v10 }
 0x1d1   :  { %584 = vmatpush.msra.mxu2 %v463_v13  ;;  %632 = vmatpush.msra.mxu3 %v423_v12 }
 0x235   :  { %v298_v2 = vpop.f32.mrf.mxu2  ;;  %v334_v6 = vpop.f32.mrf.mxu3 }
 0x236   :  { %v299_v5 = vadd.f32 %v718_v63, %v298_v2 }
 0x238   :  { %v335_v7 = vadd.f32 %v334_v6, %v299_v5 }
 0x23a   :  { %v338_v8 = vmul.f32 0.2, %v335_v7  ;;  %vm337_vm5 = vcmp.ge.f32.partialorder %v335_v7, 0.0 }
 0x23c   :  { %v339_v9 = vsel %vm337_vm5, %v335_v7, %v338_v8 }
 0x23d   :  { %376 = vmatmul.f32.vlgmr.msrb.gmra.mxu0 %v339_v9  ;;  %396 = vmatmul.f32.vlgmr.msrb.gmra.mxu1 %v339_v9 }
 0x23e   :  { %657 = vmatpush.msrb.mxu0 %v1051_v40 }
 0x240   :  { %658 = vmatpush.msrb.mxu0 %v1057_v42 }
 0x242   :  { %659 = vmatpush.msrb.mxu0 %v1062_v44 }
 0x244   :  { %660 = vmatpush.msrb.mxu0 %v1070_v46 }
 0x246   :  { %661 = vmatpush.msrb.mxu0 %v1078_v48 }
 0x248   :  { %662 = vmatpush.msrb.mxu0 %v1086_v50 }
 0x24a   :  { %663 = vmatpush.msrb.mxu0 %v1094_v52 }
 0x24c   :  { %664 = vmatpush.msrb.mxu0 %v1102_v54 }
 0x24e   :  { %665 = vmatpush.msrb.mxu0 %v1110_v56 }
 0x250   :  { %666 = vmatpush.msrb.mxu0 %v1118_v58 }
 0x252   :  { %667 = vmatpush.msrb.mxu0 %v1126_v60 }
 0x254   :  { %668 = vmatpush.msrb.mxu0 %v1134_v62 }
 0x256   :  { %669 = vmatpush.msrb.mxu0 %v466_v1 }
 0x258   :  { %670 = vmatpush.msrb.mxu0 %v465_v4 }
 0x25a   :  { %671 = vmatpush.msrb.mxu0 %v464_v11 }
 0x25c   :  { %672 = vmatpush.msrb.mxu0 %v463_v13 }
 0x2ba   :  { %v377_v15 = vpop.f32.mrf.mxu0  ;;  %v397_v16 = vpop.f32.mrf.mxu1 }
 0x2bb   :  { %v378_v17 = vadd.f32 %v719_v14, %v377_v15  ;;  %v398_v18 = vadd.f32 %v397_v16, %v299_v5 }
 0x2bd   :  { %v401_v19 = vmul.f32 0.2, %v398_v18  ;;  %459 = vmatmul.f32.vlgmr.msrb.gmra.mxu3 %v378_v17  ;;  %499 = vmatmul.f32.vlgmr.msra.gmra.mxu0 %v378_v17  ;;  %vm400_vm6 = vcmp.ge.f32.partialorder %v398_v18, 0.0 }
 0x2be   :  { %545 = vmatmul.f32.vlgmr.msra.gmra.mxu1 %v378_v17 }
 0x2bf   :  { %v402_v20 = vsel %vm400_vm6, %v398_v18, %v401_v19 }
 0x2c0   :  { %419 = vmatmul.f32.vlgmr.msrb.gmra.mxu2 %v402_v20 }
 0x2c8   :  { %585 = vmatmul.f32.vlgmr.msra.gmra.mxu2 %v378_v17 }
 0x33a   :  { %v500_v23 = vpop.f32.mrf.mxu0 }
 0x33b   :  { %v501_v24 = vadd.f32 %v720_v21, %v500_v23  ;;  %v546_v25 = vpop.f32.mrf.mxu1 }
 0x33c   :  { %v547_v26 = vadd.f32 %v721_v22, %v546_v25 }
 0x33d   :  { %504 = vst [vmem:[%s1226_s15] sm:$0x3] %v501_v24  }
 0x33e   :  { %699 = vst [vmem:[%s1225_s14 + $0x2] sm:$0x3] %v547_v26  }
 0x340   :  { %v460_v28 = vpop.f32.mrf.mxu3 }
 0x341   :  { %v461_v29 = vadd.f32 %v722_v27, %v460_v28 }
 0x343   :  { %503 = vst [vmem:[%s1225_s14] sm:$0x3] %v461_v29   ;;  %v420_v30 = vpop.f32.mrf.mxu2 }
 0x344   :  { %v421_v31 = vadd.f32 %v719_v14, %v420_v30 }
 0x346   :  { %633 = vmatmul.f32.vlgmr.msra.gmra.mxu3 %v421_v31  ;;  %673 = vmatmul.f32.vlgmr.msrb.gmra.mxu0 %v421_v31 }
 0x34b   :  { %v586_v33 = vpop.f32.mrf.mxu2 }
 0x34c   :  { %v587_v34 = vadd.f32 %v723_v32, %v586_v33 }
 0x34e   :  { %700 = vst [vmem:[%s1226_s15 + $0x2] sm:$0x3] %v587_v34  }
 0x3c3   :  { %v674_v36 = vpop.f32.mrf.mxu0 }
 0x3c4   :  { %v675_v37 = vadd.f32 %v724_v35, %v674_v36 }
 0x3c6   :  { %704 = vst [vmem:[%s1226_s15 + $0x4] sm:$0x3] %v675_v37  }
 0x3c9   :  { %v634_v39 = vpop.f32.mrf.mxu3 }
 0x3ca   :  { %v635_v40 = vadd.f32 %v725_v38, %v634_v39 }
 0x3cc   :  { %703 = vst [vmem:[%s1225_s14 + $0x4] sm:$0x3] %v635_v40  }
 0x3cd   :  { %693 = vsyncpa [#allocation3], 1 }
 0x3ce   :  { %694 = vsyncpa [#allocation5], 1 }
 0x3cf   :  { %695 = vsyncpa [#allocation8], 1 }
 0x3d0   :  { %696 = vsyncpa [#allocation11], 1 }

</bundles_post_ra>
